<compile_context>
chip_gen: v6e
topology: v6e:2x2x1
jax: 0.10.0
libtpu: 0.0.40
codegen_flags: <defaults>
</compile_context>

<pallas_src>
import functools

import jax
import jax.numpy as jnp
from jax.experimental import pallas as pl
from jax.experimental.pallas import tpu as pltpu

LANE = 128


def _round_up(x, m):
    return ((x + m - 1) // m) * m


# ------------------------------ fused kernel ------------------------------- #

def _bottleneck_kernel(x_ref, w1_ref, b1_ref, w2_ref, b2_ref, w3_ref, b3_ref,
                       *rest, stride, has_proj):
    if has_proj:
        wsc_ref, bsc_ref, o_ref, h1p_ref = rest
    else:
        o_ref, h1p_ref = rest

    f32 = jnp.float32
    cdt = w1_ref.dtype                       # MXU input dtype (bf16 or f32)
    s = stride
    B, _, Ho, Wo, Cin = x_ref.shape          # (batch_tile, s*s, Ho, Wo, Cin_p)
    Pp = w1_ref.shape[1]
    Cout = w3_ref.shape[1]
    M = B * Ho * Wo                          # rows of every strided-output matmul

    # conv1 (1x1) + bn1 + relu on all s*s stride phases at once --------------
    x_flat = x_ref[...].reshape(B * s * s * Ho * Wo, Cin)        # already cdt
    h1 = jnp.dot(x_flat, w1_ref[...], preferred_element_type=f32)
    h1 = jnp.maximum(h1 + b1_ref[...], 0.0)
    h1c = h1.astype(cdt).reshape(B, s * s, Ho, Wo, Pp)           # cast ONCE

    # write phase planes into the zero-bordered VMEM scratch -----------------
    # The border is re-zeroed every grid step (4 thin strips, negligible cost)
    # so correctness does not depend on step order / megacore batch splitting.
    zrow = jnp.zeros((B, s * s, 1, Wo + 2, Pp), cdt)
    zcol = jnp.zeros((B, s * s, Ho + 2, 1, Pp), cdt)
    h1p_ref[:, :, 0:1, :, :] = zrow
    h1p_ref[:, :, Ho + 1:Ho + 2, :, :] = zrow
    h1p_ref[:, :, :, 0:1, :] = zcol
    h1p_ref[:, :, :, Wo + 1:Wo + 2, :] = zcol
    h1p_ref[:, :, 1:Ho + 1, 1:Wo + 1, :] = h1c

    # conv2 (3x3, pad 1, stride s) + bn2 + relu -------------------------------
    # Tap (kh, kw) reads h1 rows s*i + kh - 1 = s*(i + qh) + rh, i.e. a
    # unit-stride (Ho, Wo) window of phase plane (rh, rc): no strided gathers,
    # no stride^2 over-compute, f32 accumulation on the MXU.
    acc = jnp.zeros((M, Pp), f32)
    for kh in range(3):
        rh = (kh - 1) % s
        qh = (kh - 1 - rh) // s
        for kw in range(3):
            rc = (kw - 1) % s
            qc = (kw - 1 - rc) // s
            win = h1p_ref[:, rh * s + rc,
                          1 + qh:1 + qh + Ho, 1 + qc:1 + qc + Wo, :]
            acc = acc + jnp.dot(win.reshape(M, Pp), w2_ref[kh * 3 + kw],
                                preferred_element_type=f32)
    h2 = jnp.maximum(acc + b2_ref[...], 0.0).astype(cdt)

    # conv3 (1x1) + bn3 --------------------------------------------------------
    out = jnp.dot(h2, w3_ref[...], preferred_element_type=f32) + b3_ref[...]

    # shortcut + residual add + relu (fused epilogue) --------------------------
    if has_proj:
        # 1x1 stride-s conv on x == 1x1 conv on phase (0, 0) of x.
        xs = x_ref[:, 0, :, :, :].reshape(M, Cin)
        out = out + jnp.dot(xs, wsc_ref[...],
                            preferred_element_type=f32) + bsc_ref[...]
    else:
        # identity shortcut: stride == 1 and Cin_p == Cout_p (checked in the
        # wrapper); relies on the padded channel lanes of x / w3 / b3 being 0.
        out = out + x_ref[:, 0, :, :, :].reshape(M, Cout).astype(f32)

    o_ref[...] = jnp.maximum(out, 0.0).reshape(B, Ho, Wo, Cout).astype(o_ref.dtype)


# ------------------------------ JAX-side glue ------------------------------ #

def fold_bn(w_conv, gamma, beta, mean, var, eps=1e-5):
    """Fold eval-mode BatchNorm into conv weight (Cout,Cin,kh,kw) + bias."""
    scale = gamma / jnp.sqrt(var + eps)
    w_f = w_conv * scale[:, None, None, None]
    b_f = beta - mean * scale
    return w_f, b_f


def init_bottleneck_params(key, in_planes, planes, stride, dtype=jnp.float32,
                           compute_dtype=jnp.bfloat16):
    """Random Bottleneck params: Pallas-padded matrices + unpadded reference."""
    expansion = 4
    keys = jax.random.split(key, 8)

    def conv_w(k, cout, cin, kh, kw):
        fan_in = cin * kh * kw
        return jax.random.normal(k, (cout, cin, kh, kw), dtype) / jnp.sqrt(fan_in)

    def bn_p(k, c):
        k1, k2, k3, k4 = jax.random.split(k, 4)
        gamma = jax.random.uniform(k1, (c,), dtype, 0.5, 1.5)
        beta = jax.random.normal(k2, (c,), dtype) * 0.1
        mean = jax.random.normal(k3, (c,), dtype) * 0.1
        var = jax.random.uniform(k4, (c,), dtype, 0.5, 1.5)
        return gamma, beta, mean, var

    cout = expansion * planes
    cin_p = _round_up(in_planes, LANE)
    p_p = _round_up(planes, LANE)
    cout_p = _round_up(cout, LANE)

    def pad2(w, r, c):  # (a, b) -> zero-padded (r, c)
        return jnp.zeros((r, c), dtype).at[:w.shape[0], :w.shape[1]].set(w)

    def pad_bias(b, c):  # biases stay f32 (epilogue math is f32)
        return jnp.zeros((1, c), jnp.float32).at[0, :b.shape[0]].set(
            b.astype(jnp.float32))

    params, ref = {}, {}

    w1c = conv_w(keys[0], planes, in_planes, 1, 1)
    w1f, b1f = fold_bn(w1c, *bn_p(keys[1], planes))
    params["w1"] = pad2(w1f[:, :, 0, 0].T, cin_p, p_p).astype(compute_dtype)
    params["b1"] = pad_bias(b1f, p_p)
    ref["w1"], ref["b1"] = w1f, b1f

    w2c = conv_w(keys[2], planes, planes, 3, 3)
    w2f, b2f = fold_bn(w2c, *bn_p(keys[3], planes))
    w2_slices = [pad2(w2f[:, :, kh, kw].T, p_p, p_p)
                 for kh in range(3) for kw in range(3)]
    params["w2"] = jnp.stack(w2_slices, axis=0).astype(compute_dtype)  # (9,Pp,Pp)
    params["b2"] = pad_bias(b2f, p_p)
    ref["w2"], ref["b2"] = w2f, b2f

    w3c = conv_w(keys[4], cout, planes, 1, 1)
    w3f, b3f = fold_bn(w3c, *bn_p(keys[5], cout))
    params["w3"] = pad2(w3f[:, :, 0, 0].T, p_p, cout_p).astype(compute_dtype)
    params["b3"] = pad_bias(b3f, cout_p)
    ref["w3"], ref["b3"] = w3f, b3f

    if stride != 1 or in_planes != cout:
        wsc = conv_w(keys[6], cout, in_planes, 1, 1)
        wsf, bsf = fold_bn(wsc, *bn_p(keys[7], cout))
        params["w_sc"] = pad2(wsf[:, :, 0, 0].T, cin_p, cout_p).astype(compute_dtype)
        params["b_sc"] = pad_bias(bsf, cout_p)
        ref["w_sc"], ref["b_sc"] = wsf, bsf
    else:
        assert in_planes == cout  # identity shortcut needs matching channels

    params["cout"] = cout
    return params, ref


def bottleneck_forward(x_nchw, params, stride, *, batch_tile=1):
    """Fused Pallas Bottleneck forward. Input/output in NCHW (PyTorch layout)."""
    N, Cin, H, W = x_nchw.shape
    s = stride
    assert H % s == 0 and W % s == 0
    assert N % batch_tile == 0, "pad the batch to a multiple of batch_tile"
    Cin_p, Pp = params["w1"].shape
    Cout_p = params["w3"].shape[1]
    Cout = params["cout"]
    Ho, Wo = H // s, W // s
    has_proj = "w_sc" in params
    if not has_proj:
        assert s == 1 and Cin == Cout, "identity shortcut shape mismatch"
    cdt = params["w1"].dtype
    B = batch_tile

    # NCHW -> stride-phase-split, channel-padded NHWC:
    #   x[n, p*s + q, i, j, c] = x_nchw[n, c, s*i + p, s*j + q]
    # Folded into the single NCHW->NHWC transpose this wrapper already needed.
    x = x_nchw.reshape(N, Cin, Ho, s, Wo, s)
    x = jnp.transpose(x, (0, 3, 5, 2, 4, 1)).reshape(N, s * s, Ho, Wo, Cin)
    if Cin_p != Cin:
        x = jnp.pad(x, ((0, 0),) * 4 + ((0, Cin_p - Cin),))
    x = x.astype(cdt)

    in_specs = [
        pl.BlockSpec((B, s * s, Ho, Wo, Cin_p), lambda b: (b, 0, 0, 0, 0)),
        pl.BlockSpec((Cin_p, Pp), lambda b: (0, 0)),
        pl.BlockSpec((1, Pp), lambda b: (0, 0)),
        pl.BlockSpec((9, Pp, Pp), lambda b: (0, 0, 0)),
        pl.BlockSpec((1, Pp), lambda b: (0, 0)),
        pl.BlockSpec((Pp, Cout_p), lambda b: (0, 0)),
        pl.BlockSpec((1, Cout_p), lambda b: (0, 0)),
    ]
    args = [x, params["w1"], params["b1"], params["w2"], params["b2"],
            params["w3"], params["b3"]]
    if has_proj:
        in_specs += [pl.BlockSpec((Cin_p, Cout_p), lambda b: (0, 0)),
                     pl.BlockSpec((1, Cout_p), lambda b: (0, 0))]
        args += [params["w_sc"], params["b_sc"]]

    out = pl.pallas_call(
        functools.partial(_bottleneck_kernel, stride=s, has_proj=has_proj),
        out_shape=jax.ShapeDtypeStruct((N, Ho, Wo, Cout_p), x_nchw.dtype),
        grid_spec=pltpu.PrefetchScalarGridSpec(
            num_scalar_prefetch=0,
            grid=(N // B,),                            # batch tiles per step
            in_specs=in_specs,
            out_specs=pl.BlockSpec((B, Ho, Wo, Cout_p),
                                   lambda b: (b, 0, 0, 0)),
            scratch_shapes=[pltpu.VMEM((B, s * s, Ho + 2, Wo + 2, Pp), cdt)],
        ),
        compiler_params=pltpu.CompilerParams(
            dimension_semantics=("parallel",),          # shards both TCs on v7x
            vmem_limit_bytes=64 * 1024 * 1024),
    )(*args)

    out = out[..., :Cout]                               # strip channel padding
    return jnp.transpose(out, (0, 3, 1, 2))             # -> NCHW


def reference_forward(x, ref, stride):
    """Pure-JAX reference (NCHW, lax.conv) using the same folded weights."""
    def conv(x, w, s, pad):
        return jax.lax.conv_general_dilated(
            x, w, (s, s), pad, dimension_numbers=("NCHW", "OIHW", "NCHW"))

    h = jax.nn.relu(conv(x, ref["w1"], 1, "VALID") + ref["b1"][None, :, None, None])
    h = jax.nn.relu(conv(h, ref["w2"], stride, ((1, 1), (1, 1)))
                    + ref["b2"][None, :, None, None])
    h = conv(h, ref["w3"], 1, "VALID") + ref["b3"][None, :, None, None]
    if "w_sc" in ref:
        s = conv(x, ref["w_sc"], stride, "VALID") + ref["b_sc"][None, :, None, None]
    else:
        s = x
    return jax.nn.relu(h + s)


if __name__ == "__main__":
    key = jax.random.PRNGKey(0)
    k_param, k_x, k_param2, k_x2 = jax.random.split(key, 4)

    # 1) Projection-shortcut path (stride 2), f32 compute: strict check.
    in_planes, planes, stride = 8, 4, 2
    params, ref = init_bottleneck_params(k_param, in_planes, planes, stride,
                                         compute_dtype=jnp.float32)
    x = jax.random.normal(k_x, (2, in_planes, 16, 16), jnp.float32)  # NCHW
    out = jax.block_until_ready(bottleneck_forward(x, params, stride))
    expected = jax.block_until_ready(reference_forward(x, ref, stride))
    assert out.shape == expected.shape == (2, 4 * planes, 8, 8)
    err = jnp.max(jnp.abs(out - expected))
    assert jnp.allclose(out, expected, atol=2e-3, rtol=2e-3), f"max abs err {err}"

    # 2) Identity-shortcut path (stride 1), f32 compute, batch folded into M.
    in_planes2, planes2, stride2 = 16, 4, 1
    params2, ref2 = init_bottleneck_params(k_param2, in_planes2, planes2, stride2,
                                           compute_dtype=jnp.float32)
    x2 = jax.random.normal(k_x2, (2, in_planes2, 16, 16), jnp.float32)
    out2 = jax.block_until_ready(
        bottleneck_forward(x2, params2, stride2, batch_tile=2))
    expected2 = jax.block_until_ready(reference_forward(x2, ref2, stride2))
    assert out2.shape == expected2.shape == (2, 16, 16, 16)
    err2 = jnp.max(jnp.abs(out2 - expected2))
    assert jnp.allclose(out2, expected2, atol=2e-3, rtol=2e-3), f"max abs err {err2}"

    # 3) Recommended config on v5e/v6e/v7x: bf16 MXU inputs (default), f32
    #    accumulation + epilogue; checked against the f32 reference with a
    #    bf16-sized tolerance.
    params_bf16, _ = init_bottleneck_params(k_param, in_planes, planes, stride)
    out_bf16 = jax.block_until_ready(bottleneck_forward(x, params_bf16, stride))
    err_bf16 = jnp.max(jnp.abs(out_bf16 - expected))
    tol = 5e-2 * jnp.max(jnp.abs(expected)) + 5e-2
    assert out_bf16.shape == expected.shape and bool(err_bf16 < tol), \
        f"bf16 max abs err {err_bf16} > {tol}"

    print("KERNEL_OK")
</pallas_src>

<mosaic_0001>
module attributes {stable_mosaic.version = 11 : i64} {
  func.func @_bottleneck_kernel(%arg0: i32, %arg1: memref<1x4x8x8x128xf32, #tpu.memory_space<vmem>>, %arg2: memref<128x128xf32, #tpu.memory_space<vmem>>, %arg3: memref<1x128xf32, #tpu.memory_space<vmem>>, %arg4: memref<9x128x128xf32, #tpu.memory_space<vmem>>, %arg5: memref<1x128xf32, #tpu.memory_space<vmem>>, %arg6: memref<128x128xf32, #tpu.memory_space<vmem>>, %arg7: memref<1x128xf32, #tpu.memory_space<vmem>>, %arg8: memref<128x128xf32, #tpu.memory_space<vmem>>, %arg9: memref<1x128xf32, #tpu.memory_space<vmem>>, %arg10: memref<1x8x8x128xf32, #tpu.memory_space<vmem>>, %arg11: memref<1x4x10x10x128xf32, #tpu.memory_space<vmem>>) attributes {dimension_semantics = [#tpu.dimension_semantics<parallel>], iteration_bounds = array<i64: 2>, scalar_prefetch = 0 : i64, scratch_operands = 1 : i64, tpu.core_type = #tpu.core_type<tc>, window_params = [{transform_indices = @transform_0, window_bounds = array<i64: 1, 4, 8, 8, 128>}, {pipeline_mode = #tpu.pipeline_mode<synchronous>, transform_indices = @transform_1, window_bounds = array<i64: 128, 128>}, {pipeline_mode = #tpu.pipeline_mode<synchronous>, transform_indices = @transform_2, window_bounds = array<i64: 1, 128>}, {pipeline_mode = #tpu.pipeline_mode<synchronous>, transform_indices = @transform_3, window_bounds = array<i64: 9, 128, 128>}, {pipeline_mode = #tpu.pipeline_mode<synchronous>, transform_indices = @transform_4, window_bounds = array<i64: 1, 128>}, {pipeline_mode = #tpu.pipeline_mode<synchronous>, transform_indices = @transform_5, window_bounds = array<i64: 128, 128>}, {pipeline_mode = #tpu.pipeline_mode<synchronous>, transform_indices = @transform_6, window_bounds = array<i64: 1, 128>}, {pipeline_mode = #tpu.pipeline_mode<synchronous>, transform_indices = @transform_7, window_bounds = array<i64: 128, 128>}, {pipeline_mode = #tpu.pipeline_mode<synchronous>, transform_indices = @transform_8, window_bounds = array<i64: 1, 128>}, {transform_indices = @transform_9, window_bounds = array<i64: 1, 8, 8, 128>}]} {
    %c0 = arith.constant 0 : index
    %c0_0 = arith.constant 0 : index
    %c0_1 = arith.constant 0 : index
    %c0_2 = arith.constant 0 : index
    %c0_3 = arith.constant 0 : index
    %0 = vector.load %arg1[%c0, %c0_0, %c0_1, %c0_2, %c0_3] : memref<1x4x8x8x128xf32, #tpu.memory_space<vmem>>, vector<1x4x8x8x128xf32>
    %1 = vector.shape_cast %0 : vector<1x4x8x8x128xf32> to vector<256x128xf32>
    %c0_4 = arith.constant 0 : index
    %c0_5 = arith.constant 0 : index
    %2 = vector.load %arg2[%c0_4, %c0_5] : memref<128x128xf32, #tpu.memory_space<vmem>>, vector<128x128xf32>
    %cst = arith.constant dense<0.000000e+00> : vector<256x128xf32>
    %3 = tpu.matmul %1, %2, %cst {dimension_numbers = #tpu.dot_dimension_numbers<[1], [0], [0], [1], [0, 0, 1, 1], [], []>} : vector<256x128xf32>, vector<128x128xf32>, vector<256x128xf32> -> vector<256x128xf32>
    %c0_6 = arith.constant 0 : index
    %c0_7 = arith.constant 0 : index
    %4 = vector.load %arg3[%c0_6, %c0_7] : memref<1x128xf32, #tpu.memory_space<vmem>>, vector<1x128xf32>
    %5 = vector.broadcast %4 : vector<1x128xf32> to vector<256x128xf32>
    %6 = arith.addf %3, %5 : vector<256x128xf32>
    %cst_8 = arith.constant 0.000000e+00 : f32
    %7 = vector.broadcast %cst_8 : f32 to vector<256x128xf32>
    %8 = arith.maximumf %6, %7 : vector<256x128xf32>
    %9 = vector.shape_cast %8 : vector<256x128xf32> to vector<1x4x8x8x128xf32>
    %cst_9 = arith.constant 0.000000e+00 : f32
    %10 = vector.broadcast %cst_9 : f32 to vector<1x4x1x10x128xf32>
    %cst_10 = arith.constant 0.000000e+00 : f32
    %11 = vector.broadcast %cst_10 : f32 to vector<1x4x10x1x128xf32>
    %c0_11 = arith.constant 0 : index
    %c0_12 = arith.constant 0 : index
    %c0_13 = arith.constant 0 : index
    %c0_14 = arith.constant 0 : index
    %c0_15 = arith.constant 0 : index
    %12 = vector.load %arg11[%c0_11, %c0_12, %c0_13, %c0_14, %c0_15] : memref<1x4x10x10x128xf32, #tpu.memory_space<vmem>>, vector<1x4x1x10x128xf32>
    tpu.vector_store %arg11[%c0_11, %c0_12, %c0_13, %c0_14, %c0_15], %10 {strides = array<i32>} : memref<1x4x10x10x128xf32, #tpu.memory_space<vmem>>, vector<1x4x1x10x128xf32>,
    %c0_16 = arith.constant 0 : index
    %c0_17 = arith.constant 0 : index
    %c9 = arith.constant 9 : index
    %c0_18 = arith.constant 0 : index
    %c0_19 = arith.constant 0 : index
    %13 = vector.load %arg11[%c0_16, %c0_17, %c9, %c0_18, %c0_19] : memref<1x4x10x10x128xf32, #tpu.memory_space<vmem>>, vector<1x4x1x10x128xf32>
    tpu.vector_store %arg11[%c0_16, %c0_17, %c9, %c0_18, %c0_19], %10 {strides = array<i32>} : memref<1x4x10x10x128xf32, #tpu.memory_space<vmem>>, vector<1x4x1x10x128xf32>,
    %c0_20 = arith.constant 0 : index
    %c0_21 = arith.constant 0 : index
    %c0_22 = arith.constant 0 : index
    %c0_23 = arith.constant 0 : index
    %c0_24 = arith.constant 0 : index
    %14 = vector.load %arg11[%c0_20, %c0_21, %c0_22, %c0_23, %c0_24] : memref<1x4x10x10x128xf32, #tpu.memory_space<vmem>>, vector<1x4x10x1x128xf32>
    tpu.vector_store %arg11[%c0_20, %c0_21, %c0_22, %c0_23, %c0_24], %11 {strides = array<i32>} : memref<1x4x10x10x128xf32, #tpu.memory_space<vmem>>, vector<1x4x10x1x128xf32>,
    %c0_25 = arith.constant 0 : index
    %c0_26 = arith.constant 0 : index
    %c0_27 = arith.constant 0 : index
    %c9_28 = arith.constant 9 : index
    %c0_29 = arith.constant 0 : index
    %15 = vector.load %arg11[%c0_25, %c0_26, %c0_27, %c9_28, %c0_29] : memref<1x4x10x10x128xf32, #tpu.memory_space<vmem>>, vector<1x4x10x1x128xf32>
    tpu.vector_store %arg11[%c0_25, %c0_26, %c0_27, %c9_28, %c0_29], %11 {strides = array<i32>} : memref<1x4x10x10x128xf32, #tpu.memory_space<vmem>>, vector<1x4x10x1x128xf32>,
    %c0_30 = arith.constant 0 : index
    %c0_31 = arith.constant 0 : index
    %c1 = arith.constant 1 : index
    %c1_32 = arith.constant 1 : index
    %c0_33 = arith.constant 0 : index
    %16 = vector.load %arg11[%c0_30, %c0_31, %c1, %c1_32, %c0_33] : memref<1x4x10x10x128xf32, #tpu.memory_space<vmem>>, vector<1x4x8x8x128xf32>
    tpu.vector_store %arg11[%c0_30, %c0_31, %c1, %c1_32, %c0_33], %9 {strides = array<i32>} : memref<1x4x10x10x128xf32, #tpu.memory_space<vmem>>, vector<1x4x8x8x128xf32>,
    %cst_34 = arith.constant 0.000000e+00 : f32
    %17 = vector.broadcast %cst_34 : f32 to vector<64x128xf32>
    %c0_35 = arith.constant 0 : index
    %c3 = arith.constant 3 : index
    %c0_36 = arith.constant 0 : index
    %c0_37 = arith.constant 0 : index
    %c0_38 = arith.constant 0 : index
    %18 = vector.load %arg11[%c0_35, %c3, %c0_36, %c0_37, %c0_38] : memref<1x4x10x10x128xf32, #tpu.memory_space<vmem>>, vector<1x1x8x8x128xf32>
    %19 = vector.shape_cast %18 : vector<1x1x8x8x128xf32> to vector<1x8x8x128xf32>
    %20 = vector.shape_cast %19 : vector<1x8x8x128xf32> to vector<64x128xf32>
    %c0_39 = arith.constant 0 : index
    %c0_40 = arith.constant 0 : index
    %c0_41 = arith.constant 0 : index
    %21 = vector.load %arg4[%c0_39, %c0_40, %c0_41] : memref<9x128x128xf32, #tpu.memory_space<vmem>>, vector<1x128x128xf32>
    %22 = vector.shape_cast %21 : vector<1x128x128xf32> to vector<128x128xf32>
    %cst_42 = arith.constant dense<0.000000e+00> : vector<64x128xf32>
    %23 = tpu.matmul %20, %22, %cst_42 {dimension_numbers = #tpu.dot_dimension_numbers<[1], [0], [0], [1], [0, 0, 1, 1], [], []>} : vector<64x128xf32>, vector<128x128xf32>, vector<64x128xf32> -> vector<64x128xf32>
    %24 = arith.addf %17, %23 : vector<64x128xf32>
    %c0_43 = arith.constant 0 : index
    %c2 = arith.constant 2 : index
    %c0_44 = arith.constant 0 : index
    %c1_45 = arith.constant 1 : index
    %c0_46 = arith.constant 0 : index
    %25 = vector.load %arg11[%c0_43, %c2, %c0_44, %c1_45, %c0_46] : memref<1x4x10x10x128xf32, #tpu.memory_space<vmem>>, vector<1x1x8x8x128xf32>
    %26 = vector.shape_cast %25 : vector<1x1x8x8x128xf32> to vector<1x8x8x128xf32>
    %27 = vector.shape_cast %26 : vector<1x8x8x128xf32> to vector<64x128xf32>
    %c1_47 = arith.constant 1 : index
    %c0_48 = arith.constant 0 : index
    %c0_49 = arith.constant 0 : index
    %28 = vector.load %arg4[%c1_47, %c0_48, %c0_49] : memref<9x128x128xf32, #tpu.memory_space<vmem>>, vector<1x128x128xf32>
    %29 = vector.shape_cast %28 : vector<1x128x128xf32> to vector<128x128xf32>
    %cst_50 = arith.constant dense<0.000000e+00> : vector<64x128xf32>
    %30 = tpu.matmul %27, %29, %cst_50 {dimension_numbers = #tpu.dot_dimension_numbers<[1], [0], [0], [1], [0, 0, 1, 1], [], []>} : vector<64x128xf32>, vector<128x128xf32>, vector<64x128xf32> -> vector<64x128xf32>
    %31 = arith.addf %24, %30 : vector<64x128xf32>
    %c0_51 = arith.constant 0 : index
    %c3_52 = arith.constant 3 : index
    %c0_53 = arith.constant 0 : index
    %c1_54 = arith.constant 1 : index
    %c0_55 = arith.constant 0 : index
    %32 = vector.load %arg11[%c0_51, %c3_52, %c0_53, %c1_54, %c0_55] : memref<1x4x10x10x128xf32, #tpu.memory_space<vmem>>, vector<1x1x8x8x128xf32>
    %33 = vector.shape_cast %32 : vector<1x1x8x8x128xf32> to vector<1x8x8x128xf32>
    %34 = vector.shape_cast %33 : vector<1x8x8x128xf32> to vector<64x128xf32>
    %c2_56 = arith.constant 2 : index
    %c0_57 = arith.constant 0 : index
    %c0_58 = arith.constant 0 : index
    %35 = vector.load %arg4[%c2_56, %c0_57, %c0_58] : memref<9x128x128xf32, #tpu.memory_space<vmem>>, vector<1x128x128xf32>
    %36 = vector.shape_cast %35 : vector<1x128x128xf32> to vector<128x128xf32>
    %cst_59 = arith.constant dense<0.000000e+00> : vector<64x128xf32>
    %37 = tpu.matmul %34, %36, %cst_59 {dimension_numbers = #tpu.dot_dimension_numbers<[1], [0], [0], [1], [0, 0, 1, 1], [], []>} : vector<64x128xf32>, vector<128x128xf32>, vector<64x128xf32> -> vector<64x128xf32>
    %38 = arith.addf %31, %37 : vector<64x128xf32>
    %c0_60 = arith.constant 0 : index
    %c1_61 = arith.constant 1 : index
    %c1_62 = arith.constant 1 : index
    %c0_63 = arith.constant 0 : index
    %c0_64 = arith.constant 0 : index
    %39 = vector.load %arg11[%c0_60, %c1_61, %c1_62, %c0_63, %c0_64] : memref<1x4x10x10x128xf32, #tpu.memory_space<vmem>>, vector<1x1x8x8x128xf32>
    %40 = vector.shape_cast %39 : vector<1x1x8x8x128xf32> to vector<1x8x8x128xf32>
    %41 = vector.shape_cast %40 : vector<1x8x8x128xf32> to vector<64x128xf32>
    %c3_65 = arith.constant 3 : index
    %c0_66 = arith.constant 0 : index
    %c0_67 = arith.constant 0 : index
    %42 = vector.load %arg4[%c3_65, %c0_66, %c0_67] : memref<9x128x128xf32, #tpu.memory_space<vmem>>, vector<1x128x128xf32>
    %43 = vector.shape_cast %42 : vector<1x128x128xf32> to vector<128x128xf32>
    %cst_68 = arith.constant dense<0.000000e+00> : vector<64x128xf32>
    %44 = tpu.matmul %41, %43, %cst_68 {dimension_numbers = #tpu.dot_dimension_numbers<[1], [0], [0], [1], [0, 0, 1, 1], [], []>} : vector<64x128xf32>, vector<128x128xf32>, vector<64x128xf32> -> vector<64x128xf32>
    %45 = arith.addf %38, %44 : vector<64x128xf32>
    %c0_69 = arith.constant 0 : index
    %c0_70 = arith.constant 0 : index
    %c1_71 = arith.constant 1 : index
    %c1_72 = arith.constant 1 : index
    %c0_73 = arith.constant 0 : index
    %46 = vector.load %arg11[%c0_69, %c0_70, %c1_71, %c1_72, %c0_73] : memref<1x4x10x10x128xf32, #tpu.memory_space<vmem>>, vector<1x1x8x8x128xf32>
    %47 = vector.shape_cast %46 : vector<1x1x8x8x128xf32> to vector<1x8x8x128xf32>
    %48 = vector.shape_cast %47 : vector<1x8x8x128xf32> to vector<64x128xf32>
    %c4 = arith.constant 4 : index
    %c0_74 = arith.constant 0 : index
    %c0_75 = arith.constant 0 : index
    %49 = vector.load %arg4[%c4, %c0_74, %c0_75] : memref<9x128x128xf32, #tpu.memory_space<vmem>>, vector<1x128x128xf32>
    %50 = vector.shape_cast %49 : vector<1x128x128xf32> to vector<128x128xf32>
    %cst_76 = arith.constant dense<0.000000e+00> : vector<64x128xf32>
    %51 = tpu.matmul %48, %50, %cst_76 {dimension_numbers = #tpu.dot_dimension_numbers<[1], [0], [0], [1], [0, 0, 1, 1], [], []>} : vector<64x128xf32>, vector<128x128xf32>, vector<64x128xf32> -> vector<64x128xf32>
    %52 = arith.addf %45, %51 : vector<64x128xf32>
    %c0_77 = arith.constant 0 : index
    %c1_78 = arith.constant 1 : index
    %c1_79 = arith.constant 1 : index
    %c1_80 = arith.constant 1 : index
    %c0_81 = arith.constant 0 : index
    %53 = vector.load %arg11[%c0_77, %c1_78, %c1_79, %c1_80, %c0_81] : memref<1x4x10x10x128xf32, #tpu.memory_space<vmem>>, vector<1x1x8x8x128xf32>
    %54 = vector.shape_cast %53 : vector<1x1x8x8x128xf32> to vector<1x8x8x128xf32>
    %55 = vector.shape_cast %54 : vector<1x8x8x128xf32> to vector<64x128xf32>
    %c5 = arith.constant 5 : index
    %c0_82 = arith.constant 0 : index
    %c0_83 = arith.constant 0 : index
    %56 = vector.load %arg4[%c5, %c0_82, %c0_83] : memref<9x128x128xf32, #tpu.memory_space<vmem>>, vector<1x128x128xf32>
    %57 = vector.shape_cast %56 : vector<1x128x128xf32> to vector<128x128xf32>
    %cst_84 = arith.constant dense<0.000000e+00> : vector<64x128xf32>
    %58 = tpu.matmul %55, %57, %cst_84 {dimension_numbers = #tpu.dot_dimension_numbers<[1], [0], [0], [1], [0, 0, 1, 1], [], []>} : vector<64x128xf32>, vector<128x128xf32>, vector<64x128xf32> -> vector<64x128xf32>
    %59 = arith.addf %52, %58 : vector<64x128xf32>
    %c0_85 = arith.constant 0 : index
    %c3_86 = arith.constant 3 : index
    %c1_87 = arith.constant 1 : index
    %c0_88 = arith.constant 0 : index
    %c0_89 = arith.constant 0 : index
    %60 = vector.load %arg11[%c0_85, %c3_86, %c1_87, %c0_88, %c0_89] : memref<1x4x10x10x128xf32, #tpu.memory_space<vmem>>, vector<1x1x8x8x128xf32>
    %61 = vector.shape_cast %60 : vector<1x1x8x8x128xf32> to vector<1x8x8x128xf32>
    %62 = vector.shape_cast %61 : vector<1x8x8x128xf32> to vector<64x128xf32>
    %c6 = arith.constant 6 : index
    %c0_90 = arith.constant 0 : index
    %c0_91 = arith.constant 0 : index
    %63 = vector.load %arg4[%c6, %c0_90, %c0_91] : memref<9x128x128xf32, #tpu.memory_space<vmem>>, vector<1x128x128xf32>
    %64 = vector.shape_cast %63 : vector<1x128x128xf32> to vector<128x128xf32>
    %cst_92 = arith.constant dense<0.000000e+00> : vector<64x128xf32>
    %65 = tpu.matmul %62, %64, %cst_92 {dimension_numbers = #tpu.dot_dimension_numbers<[1], [0], [0], [1], [0, 0, 1, 1], [], []>} : vector<64x128xf32>, vector<128x128xf32>, vector<64x128xf32> -> vector<64x128xf32>
    %66 = arith.addf %59, %65 : vector<64x128xf32>
    %c0_93 = arith.constant 0 : index
    %c2_94 = arith.constant 2 : index
    %c1_95 = arith.constant 1 : index
    %c1_96 = arith.constant 1 : index
    %c0_97 = arith.constant 0 : index
    %67 = vector.load %arg11[%c0_93, %c2_94, %c1_95, %c1_96, %c0_97] : memref<1x4x10x10x128xf32, #tpu.memory_space<vmem>>, vector<1x1x8x8x128xf32>
    %68 = vector.shape_cast %67 : vector<1x1x8x8x128xf32> to vector<1x8x8x128xf32>
    %69 = vector.shape_cast %68 : vector<1x8x8x128xf32> to vector<64x128xf32>
    %c7 = arith.constant 7 : index
    %c0_98 = arith.constant 0 : index
    %c0_99 = arith.constant 0 : index
    %70 = vector.load %arg4[%c7, %c0_98, %c0_99] : memref<9x128x128xf32, #tpu.memory_space<vmem>>, vector<1x128x128xf32>
    %71 = vector.shape_cast %70 : vector<1x128x128xf32> to vector<128x128xf32>
    %cst_100 = arith.constant dense<0.000000e+00> : vector<64x128xf32>
    %72 = tpu.matmul %69, %71, %cst_100 {dimension_numbers = #tpu.dot_dimension_numbers<[1], [0], [0], [1], [0, 0, 1, 1], [], []>} : vector<64x128xf32>, vector<128x128xf32>, vector<64x128xf32> -> vector<64x128xf32>
    %73 = arith.addf %66, %72 : vector<64x128xf32>
    %c0_101 = arith.constant 0 : index
    %c3_102 = arith.constant 3 : index
    %c1_103 = arith.constant 1 : index
    %c1_104 = arith.constant 1 : index
    %c0_105 = arith.constant 0 : index
    %74 = vector.load %arg11[%c0_101, %c3_102, %c1_103, %c1_104, %c0_105] : memref<1x4x10x10x128xf32, #tpu.memory_space<vmem>>, vector<1x1x8x8x128xf32>
    %75 = vector.shape_cast %74 : vector<1x1x8x8x128xf32> to vector<1x8x8x128xf32>
    %76 = vector.shape_cast %75 : vector<1x8x8x128xf32> to vector<64x128xf32>
    %c8 = arith.constant 8 : index
    %c0_106 = arith.constant 0 : index
    %c0_107 = arith.constant 0 : index
    %77 = vector.load %arg4[%c8, %c0_106, %c0_107] : memref<9x128x128xf32, #tpu.memory_space<vmem>>, vector<1x128x128xf32>
    %78 = vector.shape_cast %77 : vector<1x128x128xf32> to vector<128x128xf32>
    %cst_108 = arith.constant dense<0.000000e+00> : vector<64x128xf32>
    %79 = tpu.matmul %76, %78, %cst_108 {dimension_numbers = #tpu.dot_dimension_numbers<[1], [0], [0], [1], [0, 0, 1, 1], [], []>} : vector<64x128xf32>, vector<128x128xf32>, vector<64x128xf32> -> vector<64x128xf32>
    %80 = arith.addf %73, %79 : vector<64x128xf32>
    %c0_109 = arith.constant 0 : index
    %c0_110 = arith.constant 0 : index
    %81 = vector.load %arg5[%c0_109, %c0_110] : memref<1x128xf32, #tpu.memory_space<vmem>>, vector<1x128xf32>
    %82 = vector.broadcast %81 : vector<1x128xf32> to vector<64x128xf32>
    %83 = arith.addf %80, %82 : vector<64x128xf32>
    %cst_111 = arith.constant 0.000000e+00 : f32
    %84 = vector.broadcast %cst_111 : f32 to vector<64x128xf32>
    %85 = arith.maximumf %83, %84 : vector<64x128xf32>
    %c0_112 = arith.constant 0 : index
    %c0_113 = arith.constant 0 : index
    %86 = vector.load %arg6[%c0_112, %c0_113] : memref<128x128xf32, #tpu.memory_space<vmem>>, vector<128x128xf32>
    %cst_114 = arith.constant dense<0.000000e+00> : vector<64x128xf32>
    %87 = tpu.matmul %85, %86, %cst_114 {dimension_numbers = #tpu.dot_dimension_numbers<[1], [0], [0], [1], [0, 0, 1, 1], [], []>} : vector<64x128xf32>, vector<128x128xf32>, vector<64x128xf32> -> vector<64x128xf32>
    %c0_115 = arith.constant 0 : index
    %c0_116 = arith.constant 0 : index
    %88 = vector.load %arg7[%c0_115, %c0_116] : memref<1x128xf32, #tpu.memory_space<vmem>>, vector<1x128xf32>
    %89 = vector.broadcast %88 : vector<1x128xf32> to vector<64x128xf32>
    %90 = arith.addf %87, %89 : vector<64x128xf32>
    %c0_117 = arith.constant 0 : index
    %c0_118 = arith.constant 0 : index
    %c0_119 = arith.constant 0 : index
    %c0_120 = arith.constant 0 : index
    %c0_121 = arith.constant 0 : index
    %91 = vector.load %arg1[%c0_117, %c0_118, %c0_119, %c0_120, %c0_121] : memref<1x4x8x8x128xf32, #tpu.memory_space<vmem>>, vector<1x1x8x8x128xf32>
    %92 = vector.shape_cast %91 : vector<1x1x8x8x128xf32> to vector<1x8x8x128xf32>
    %93 = vector.shape_cast %92 : vector<1x8x8x128xf32> to vector<64x128xf32>
    %c0_122 = arith.constant 0 : index
    %c0_123 = arith.constant 0 : index
    %94 = vector.load %arg8[%c0_122, %c0_123] : memref<128x128xf32, #tpu.memory_space<vmem>>, vector<128x128xf32>
    %cst_124 = arith.constant dense<0.000000e+00> : vector<64x128xf32>
    %95 = tpu.matmul %93, %94, %cst_124 {dimension_numbers = #tpu.dot_dimension_numbers<[1], [0], [0], [1], [0, 0, 1, 1], [], []>} : vector<64x128xf32>, vector<128x128xf32>, vector<64x128xf32> -> vector<64x128xf32>
    %96 = arith.addf %90, %95 : vector<64x128xf32>
    %c0_125 = arith.constant 0 : index
    %c0_126 = arith.constant 0 : index
    %97 = vector.load %arg9[%c0_125, %c0_126] : memref<1x128xf32, #tpu.memory_space<vmem>>, vector<1x128xf32>
    %98 = vector.broadcast %97 : vector<1x128xf32> to vector<64x128xf32>
    %99 = arith.addf %96, %98 : vector<64x128xf32>
    %cst_127 = arith.constant 0.000000e+00 : f32
    %100 = vector.broadcast %cst_127 : f32 to vector<64x128xf32>
    %101 = arith.maximumf %99, %100 : vector<64x128xf32>
    %102 = vector.shape_cast %101 : vector<64x128xf32> to vector<1x8x8x128xf32>
    %c0_128 = arith.constant 0 : index
    %c0_129 = arith.constant 0 : index
    %c0_130 = arith.constant 0 : index
    %c0_131 = arith.constant 0 : index
    %103 = vector.load %arg10[%c0_128, %c0_129, %c0_130, %c0_131] : memref<1x8x8x128xf32, #tpu.memory_space<vmem>>, vector<1x8x8x128xf32>
    tpu.vector_store %arg10[%c0_128, %c0_129, %c0_130, %c0_131], %102 {strides = array<i32>} : memref<1x8x8x128xf32, #tpu.memory_space<vmem>>, vector<1x8x8x128xf32>,
    return
  }
  func.func @transform_0(%arg0: i32) -> (i32, i32, i32, i32, i32) {
    %c0_i32 = arith.constant 0 : i32
    %c0_i32_0 = arith.constant 0 : i32
    %c0_i32_1 = arith.constant 0 : i32
    %c0_i32_2 = arith.constant 0 : i32
    %c0_i32_3 = arith.constant 0 : i32
    return %arg0, %c0_i32, %c0_i32_0, %c0_i32_1, %c0_i32_2 : i32, i32, i32, i32, i32
  }
  func.func @transform_1(%arg0: i32) -> (i32, i32) {
    %c0_i32 = arith.constant 0 : i32
    %c0_i32_0 = arith.constant 0 : i32
    %c0_i32_1 = arith.constant 0 : i32
    return %c0_i32, %c0_i32_0 : i32, i32
  }
  func.func @transform_2(%arg0: i32) -> (i32, i32) {
    %c0_i32 = arith.constant 0 : i32
    %c0_i32_0 = arith.constant 0 : i32
    %c0_i32_1 = arith.constant 0 : i32
    return %c0_i32, %c0_i32_0 : i32, i32
  }
  func.func @transform_3(%arg0: i32) -> (i32, i32, i32) {
    %c0_i32 = arith.constant 0 : i32
    %c0_i32_0 = arith.constant 0 : i32
    %c0_i32_1 = arith.constant 0 : i32
    %c0_i32_2 = arith.constant 0 : i32
    return %c0_i32, %c0_i32_0, %c0_i32_1 : i32, i32, i32
  }
  func.func @transform_4(%arg0: i32) -> (i32, i32) {
    %c0_i32 = arith.constant 0 : i32
    %c0_i32_0 = arith.constant 0 : i32
    %c0_i32_1 = arith.constant 0 : i32
    return %c0_i32, %c0_i32_0 : i32, i32
  }
  func.func @transform_5(%arg0: i32) -> (i32, i32) {
    %c0_i32 = arith.constant 0 : i32
    %c0_i32_0 = arith.constant 0 : i32
    %c0_i32_1 = arith.constant 0 : i32
    return %c0_i32, %c0_i32_0 : i32, i32
  }
  func.func @transform_6(%arg0: i32) -> (i32, i32) {
    %c0_i32 = arith.constant 0 : i32
    %c0_i32_0 = arith.constant 0 : i32
    %c0_i32_1 = arith.constant 0 : i32
    return %c0_i32, %c0_i32_0 : i32, i32
  }
  func.func @transform_7(%arg0: i32) -> (i32, i32) {
    %c0_i32 = arith.constant 0 : i32
    %c0_i32_0 = arith.constant 0 : i32
    %c0_i32_1 = arith.constant 0 : i32
    return %c0_i32, %c0_i32_0 : i32, i32
  }
  func.func @transform_8(%arg0: i32) -> (i32, i32) {
    %c0_i32 = arith.constant 0 : i32
    %c0_i32_0 = arith.constant 0 : i32
    %c0_i32_1 = arith.constant 0 : i32
    return %c0_i32, %c0_i32_0 : i32, i32
  }
  func.func @transform_9(%arg0: i32) -> (i32, i32, i32, i32) {
    %c0_i32 = arith.constant 0 : i32
    %c0_i32_0 = arith.constant 0 : i32
    %c0_i32_1 = arith.constant 0 : i32
    %c0_i32_2 = arith.constant 0 : i32
    return %arg0, %c0_i32, %c0_i32_0, %c0_i32_1 : i32, i32, i32, i32
  }
}

</mosaic_0001>

<bundles_post_ra>
// kernel: tpu_custom_call.1
= control target key start
LH: loop header
LB: loop body
LE: loop exit
PB: predicated region body
PF: predicated region fallthrough
CT: control target
= control target key end

     0   :  { %s4391_s0 = inlined_call_operand.hbm [shape: f32[2,4,8,8,128], index: 0, kind: input, shape index: {}]   ;;  %s4392_s1 = inlined_call_operand.hbm [shape: f32[128,128], index: 1, kind: input, shape index: {}]   ;;  %s4393_s2 = inlined_call_operand.vmem [shape: f32[1,128], index: 2, kind: input, shape index: {}]   ;;  %s4394_s3 = inlined_call_operand.hbm [shape: f32[9,128,128], index: 3, kind: input, shape index: {}]   ;;  %s4395_s4 = inlined_call_operand.vmem [shape: f32[1,128], index: 4, kind: input, shape index: {}]   ;;  %s4396_s5 = inlined_call_operand.hbm [shape: f32[128,128], index: 5, kind: input, shape index: {}]   ;;  %s4397_s6 = inlined_call_operand.vmem [shape: f32[1,128], index: 6, kind: input, shape index: {}]   ;;  %s4398_s7 = inlined_call_operand.hbm [shape: f32[128,128], index: 7, kind: input, shape index: {}]   ;;  %s4399_s8 = inlined_call_operand.vmem [shape: f32[1,128], index: 8, kind: input, shape index: {}]   ;;  %s4400_s9 = inlined_call_operand.hbm [shape: f32[2,8,8,128], index: 9, kind: output, shape index: {}]  }
   0x1   :  { %4438 = sst [smem:[#allocation39_spill]] %s4392_s1 }
   0x2   :  { %4439 = sst [smem:[#allocation40_spill]] %s4394_s3 }
   0x3   :  { %4440 = sst [smem:[#allocation41_spill]] %s4396_s5 }
   0x4   :  { %14 = vsyncpa [#allocation4], 0 }
   0x5   :  { %16 = vsyncpa [#allocation4 + $0x1], 0 }
   0x6   :  { %17 = vsyncpa [#allocation7], 0 }
   0x7   :  { %18 = vsyncpa [#allocation10], 0 }
   0x8   :  { %19 = vsyncpa [#allocation5], 0 }
   0x9   :  { %21 = vsyncpa [#allocation5 + $0x1], 0  ;;  %s3820_s30 = smov 0   ;;  %s3822_s10 = smov 0  }
   0xa   :  { %s3824_s11 = smov 0   ;;  %s3826_s12 = smov 0  }
   0xb LB: > { %s3841_s13 = sadd.s32 4294967295, %s3757_s12   ;;  %s2525_s14 = sadd.s32 4294967294, %s3757_s12   ;;  %s3757_s12 = sphi %s3826_s12, %s4508_s12   ;;  %s3753_s11 = sphi %s3824_s11, %s4507_s11   ;;  %s3749_s10 = sphi %s3822_s10, %s4506_s10   ;;  %s3745_s30 = sphi %s3820_s30, %s4505_s30  }
   0xc   : > { %p47_p0 = scmp.ne.s32.totalorder %s3749_s10, %s3745_s30  ;;  %p4401_p1 = scmp.eq.s32.totalorder %s3841_s13, 0 }
   0xd   : > { %p239_p2 = scmp.eq.s32.totalorder %s3841_s13, 1  ;;  %p245_p3 = scmp.eq.s32.totalorder %s2525_s14, 1 }
   0xe   : > { %p3850_p4 = por %p4401_p1, %p47_p0  ;;  %p2526_p5 = scmp.ge.s32.totalorder %s3757_s12, 1 }
   0xf   : > { %p3855_p6 = por %p245_p3, %p47_p0  ;;  %p252_p7 = scmp.lt.s32.totalorder %s3757_s12, 3 }
  0x10   : > { %s4441_s15 = scalar_select %p3850_p4, 1, 0 }
  0x11   : > { %s4442_s16 = scalar_select %p3855_p6, 1, 0 }
  0x12   : > { %p3860_p8 = pnand %p2526_p5, %p252_p7  ;;  %s3759_s18 = smov [#allocation6]  }
  0x13   : > { %s264_s19 = sshll.u32 %s3759_s18, 4  ;;  %s3760_s21 = smov [#allocation9]   ;;  %s265_s19 = int_to_ptr.vmem [resolvable:$true] %s264_s19 }
  0x14   : > { %s4443_s17 = scalar_select %p3860_p8, 1, 0 }
  0x15   : > { %p3481_p9 = pneg %p3860_p8  ;;  %s296_s22 = sshll.u32 %s3760_s21, 4  ;;  %s297_s22 = int_to_ptr.vmem [resolvable:$true] %s296_s22 }
  0x16   : > { %s3761_s23 = smov [#allocation8]   ;;  %s3564_s25 = scalar_lea.vmem %s265_s19, 2048 }
  0x17   : > { %p3869_p11 = pnand %p3481_p9, %p4401_p1  ;;  %s280_s24 = sshll.u32 %s3761_s23, 4  ;;  %s281_s24 = int_to_ptr.vmem [resolvable:$true] %s280_s24 }
  0x18   : > { %p3565_p13 = scmp.ne.s32.totalorder %s265_s19, %s3564_s25  ;;  %p3572_p5 = scmp.lt.s32.totalorder %s265_s19, %s265_s19 }
  0x19   : > { %p3555_p12 = pneg %p3869_p11  ;;  %p3573_p7 = scmp.lt.s32.totalorder %s3564_s25, %s3564_s25 }
  0x1b   : > { %p3567_p0 = pnand %p3565_p13, %p3555_p12  ;;  %p3574_p9 = por %p3573_p7, %p3572_p5 }
  0x1d   : > { %p3568_p3 = pneg %p3567_p0 }
  0x1f   : > { %p3575_p10 = pnand %p3574_p9, %p3568_p3 }
  0x21   : > { %3578 = shalt.err (!%p3575_p10)
}
  0x22   : > { %s4402_s26 = smov 128   ;;  %s4403_s27 = smov 8  }
  0x23   : > { %s4445_s1 = sld [smem:[#allocation39_spill]]  ;;  %s3590_s14 = scalar_lea.vmem %s297_s22, 2048 }
  0x24   : > { %p3591_p13 = scmp.ne.s32.totalorder %s297_s22, %s3590_s14  ;;  %p3598_p3 = scmp.lt.s32.totalorder %s297_s22, %s297_s22 }
  0x25   : > { %p3599_p10 = scmp.lt.s32.totalorder %s3590_s14, %s3590_s14 }
  0x26   : > { %p3593_p0 = pnand %p3591_p13, %p3555_p12 }
  0x27   : > { %p3600_p7 = por %p3599_p10, %p3598_p3 }
  0x28   : > { %p3594_p5 = pneg %p3593_p0 }
  0x29   : > { %3484 = dma.hbm_to_vmem [thread:$0]  (!%p3869_p11), %s4445_s1, 2048, %s265_s19, [#allocation7], %s4402_s26, %s4402_s26, %s4403_s27  }
  0x2a   : > { %p3601_p9 = pnand %p3600_p7, %p3594_p5 }
  0x2c   : > { %3604 = shalt.err (!%p3601_p9)
}
  0x2d   : > { %s4446_s5 = sld [smem:[#allocation41_spill]]  ;;  %s3616_s19 = scalar_lea.vmem %s281_s24, 18432 }
  0x2e   : > { %p3617_p1 = scmp.ne.s32.totalorder %s281_s24, %s3616_s19  ;;  %p3624_p3 = scmp.lt.s32.totalorder %s281_s24, %s281_s24 }
  0x2f   : > { %p3625_p5 = scmp.lt.s32.totalorder %s3616_s19, %s3616_s19 }
  0x30   : > { %p3619_p13 = pnand %p3617_p1, %p3555_p12 }
  0x31   : > { %p3626_p10 = por %p3625_p5, %p3624_p3 }
  0x32   : > { %p3620_p0 = pneg %p3619_p13 }
  0x33   : > { %3490 = dma.hbm_to_vmem [thread:$0]  (!%p3869_p11), %s4446_s5, 2048, %s297_s22, [#allocation10], %s4402_s26, %s4402_s26, %s4403_s27  }
  0x34   : > { %p3627_p7 = pnand %p3626_p10, %p3620_p0 }
  0x36   : > { %3630 = shalt.err (!%p3627_p7)
}
  0x37   : > { %s4447_s3 = sld [smem:[#allocation40_spill]]  ;;  %s3764_s22 = smov [#allocation11]  }
  0x38   : > { %s312_s28 = sshll.u32 %s3764_s22, 4  ;;  %s313_s28 = int_to_ptr.vmem [resolvable:$true] %s312_s28 }
  0x39   : > { %s3642_s29 = scalar_lea.vmem %s313_s28, 2048  ;;  %p3650_p0 = scmp.lt.s32.totalorder %s313_s28, %s313_s28 }
  0x3a   : > { %p3643_p1 = scmp.ne.s32.totalorder %s313_s28, %s3642_s29  ;;  %p3651_p3 = scmp.lt.s32.totalorder %s3642_s29, %s3642_s29 }
  0x3c   : > { %p3645_p9 = pnand %p3643_p1, %p3555_p12  ;;  %p3652_p5 = por %p3651_p3, %p3650_p0 }
  0x3d   : > { %3487 = dma.hbm_to_vmem [thread:$0]  (!%p3869_p11), %s4447_s3, 18432, %s281_s24, [#allocation7], %s4402_s26, %s4402_s26, %s4403_s27  }
  0x3e   : > { %p3646_p13 = pneg %p3645_p9 }
  0x40   : > { %p3653_p10 = pnand %p3652_p5, %p3646_p13 }
  0x42   : > { %3656 = shalt.err (!%p3653_p10)
}
  0x43   : > { %3493 = dma.hbm_to_vmem [thread:$0]  (!%p3869_p11), %s4398_s7, 2048, %s313_s28, [#allocation10], %s4402_s26, %s4402_s26, %s4403_s27  }
  0x44   : > { %s3920_s18 = sadd.s32 1, %s3757_s12   ;;  %s34_s20 = sadd.s32 1, %s3753_s11 }
  0x45   : > { %s31_s21 = ssub.s32 %s3757_s12, %s3920_s18  ;;  %p41_p12 = scmp.ne.s32.totalorder %s3753_s11, %s3749_s10 }
  0x46   : > { %p32_p7 = scmp.eq.s32.totalorder %s31_s21, 0  ;;  %p42_p1 = scmp.eq.s32.totalorder %s3757_s12, 0 }
  0x47   : > { %p3930_p9 = por %p239_p2, %p41_p12  ;;  %p3506_p13 = scmp.lt.s32.totalorder %s3757_s12, 2 }
  0x48   : > { %s3936_s23 = scalar_select %p32_p7, %s3753_s11, %s34_s20  }
  0x49   : > { %s4448_s19 = scalar_select %p3930_p9, 1, 0 }
  0x4a   : > { %p43_p0 = por %p42_p1, %p41_p12  ;;  %s329_s25 = sand.u32 1, %s3753_s11  }
  0x4b   : > { %s2532_s22 = sshll.u32 %s329_s25, 8  ;;  %s2551_s28 = sshll.u32 %s3757_s12, 12 }
  0x4c   : > { %s3943_s14 = scalar_lea.hbm %s4391_s0, %s2551_s28  ;;  %s333_s21 = scalar_lea.vmem [#allocation3], %s2532_s22 }
  0x4d   : > { %s340_s26 = sshll.u32 %s333_s21, 4  ;;  %p3947_p2 = pnand %p3506_p13, %p43_p0  ;;  %s3945_s26 = int_to_ptr.vmem [resolvable:$true] %s340_s26 }
  0x4e   : > { %s3951_s20 = scalar_lea.sflag [#allocation4], %s329_s25  ;;  %s3657_s1 = scalar_lea.hbm %s3943_s14, 4096 }
  0x4f   : > { %p3658_p11 = scmp.ne.s32.totalorder %s3943_s14, %s3657_s1  ;;  %p3659_p3 = pneg %p3947_p2 }
  0x50   : > { %s3662_s22 = scalar_lea.hbm %s4391_s0, 8192  ;;  %p3663_p12 = scmp.lt.s32.totalorder %s3943_s14, %s4391_s0 }
  0x51   : > { %p3660_p5 = pnand %p3659_p3, %p3658_p11  ;;  %p3664_p7 = scmp.lt.s32.totalorder %s3662_s22, %s3657_s1 }
  0x53   : > { %p3661_p10 = pneg %p3660_p5  ;;  %p3665_p1 = por %p3664_p7, %p3663_p12 }
  0x55   : > { %p3666_p13 = pnand %p3665_p1, %p3661_p10 }
  0x57   : > { %3669 = shalt.err (!%p3666_p13)
}
  0x58   : > { %s3670_s25 = scalar_lea.vmem %s3945_s26, 4096  ;;  %s3765_s3 = smov [#allocation3]  }
  0x59   : > { %p3671_p0 = scmp.ne.s32.totalorder %s3945_s26, %s3670_s25  ;;  %s3675_s5 = sshll.u32 %s3765_s3, 4  ;;  %s3676_s5 = int_to_ptr.vmem [resolvable:$false] %s3675_s5 }
  0x5a   : > { %s3677_s28 = scalar_lea.vmem %s3676_s5, 8192  ;;  %p3678_p5 = scmp.lt.s32.totalorder %s3945_s26, %s3676_s5 }
  0x5b   : > { %p3673_p6 = pnand %p3671_p0, %p3659_p3  ;;  %p3679_p9 = scmp.lt.s32.totalorder %s3677_s28, %s3670_s25 }
  0x5d   : > { %p3674_p11 = pneg %p3673_p6  ;;  %p3680_p4 = por %p3679_p9, %p3678_p5 }
  0x5f   : > { %p3681_p8 = pnand %p3680_p4, %p3674_p11 }
  0x61   : > { %3684 = shalt.err (!%p3681_p8)
}
  0x62   : > { %s4450_s1 = smov 8   ;;  %s4451_s29 = smov 128  }
  0x63   : > { %3497 = dma.hbm_to_vmem [thread:$0]  (!%p3947_p2), %s3943_s14, 4096, %s3945_s26, %s3951_s20, %s4451_s29, %s4451_s29, %s4450_s1  }
  0x64   : > { %p4452_p6 = scmp.ne.s32.totalorder %s4443_s17, 0 }
  0x66   : > { %352 = sbr.rel (%p4452_p6) target bundleno = 987 (0x3db), region = 56 }
  0x6b   : > { %s3978_s3 = sand.u32 1, %s3749_s10   ;;  %p4453_p4 = scmp.ne.s32.totalorder %s4441_s15, 0 }
  0x6c   : > { %s2536_s5 = sshll.u32 %s3978_s3, 8  ;;  %s355_s22 = scalar_lea.sflag [#allocation4], %s3978_s3 }
  0x6d   : > { %s3982_s24 = scalar_lea.vmem [#allocation3], %s2536_s5 }
  0x6e   : > { %3728 = dma.done.wait (%p4453_p4), %s355_s22, 4096  }
  0x6f   : > { %3730 = vsyncadd (%p4453_p4), %s355_s22, 4294963200  ;;  %p4454_p8 = scmp.eq.s32.totalorder %s3841_s13, 0 }
  0x71   : > { %3732 = dma.done.wait (%p4454_p8), [#allocation7], 20480   ;;  %p4455_p9 = pmov %p4454_p8 }
  0x72   : > { %p4456_p2 = pmov %p4454_p8 }
  0x73   : > { %3734 = vsyncadd (%p4455_p9), [#allocation7], 4294946816 }
  0x74   : > { %3736 = dma.done.wait (%p4456_p2), [#allocation10], 4096   ;;  %p4457_p3 = pmov %p4456_p2 }
  0x75   : > { %v456_v0 = vld [vmem:[#allocation6 + $0x78] sm:$0xff]  ;;  %v455_v1 = vld [vmem:[#allocation6 + $0x70] sm:$0xff]  ;;  %v454_v2 = vld [vmem:[#allocation6 + $0x68] sm:$0xff]  ;;  %v3766_v58 = vmov 0.0   ;;  %s2541_s28 = sshll.u32 %s3978_s3, 6  ;;  %s2552_s5 = sshll.u32 %s3841_s13, 10 }
  0x76   : > { %3738 = vsyncadd (%p4457_p3), [#allocation10], 4294963200  ;;  %2865 = vmatprep.subr.mxu0 %v456_v0  ;;  %v453_v3 = vld [vmem:[#allocation6 + $0x60] sm:$0xff]  ;;  %v452_v5 = vld [vmem:[#allocation6 + $0x58] sm:$0xff]  ;;  %725 = vst [vmem:[#allocation2 + $0x140] sm:$0xff] %v3766_v58  ;;  %s4331_s1 = scalar_lea.vmem [#allocation12], %s2541_s28  ;;  %s4346_s15 = scalar_lea.hbm %s4400_s9, %s2552_s5 }
  0x77   : > { %2866 = vmatpush3.msra.mxu0 %v456_v0  ;;  %v409_v4 = vld [vmem:[%s3982_s24] sm:$0xff]  ;;  %v451_v6 = vld [vmem:[#allocation6 + $0x50] sm:$0xff]  ;;  %v450_v7 = vld [vmem:[#allocation6 + $0x48] sm:$0xff]  ;;  %726 = vst [vmem:[#allocation2 + $0x148] sm:$0x3] %v3766_v58  ;;  %s2414_s29 = sshll.u32 %s4331_s1, 4  ;;  %s4340_s29 = int_to_ptr.vmem [resolvable:$true] %s2414_s29 }
  0x78   : > { %2867 = vmatprep.subr.mxu0 %v455_v1  ;;  %2897 = vmatprep.mubr.f32.mxu0 %v409_v4  ;;  %v449_v8 = vld [vmem:[#allocation6 + $0x40] sm:$0xff]  ;;  %v448_v9 = vld [vmem:[#allocation6 + $0x38] sm:$0xff]  ;;  %v447_v10 = vld [vmem:[#allocation6 + $0x30] sm:$0xff]  ;;  %727 = vst [vmem:[#allocation2 + $0x1e0] sm:$0xff] %v3766_v58  ;;  %s2401_s17 = scalar_lea.sflag [#allocation5], %s3978_s3  ;;  %s3685_s26 = scalar_lea.vmem %s4340_s29, 1024 }
  0x79   : > { %2868 = vmatpush3.msra.mxu0 %v455_v1  ;;  %v446_v11 = vld [vmem:[#allocation6 + $0x28] sm:$0xff]  ;;  %v445_v12 = vld [vmem:[#allocation6 + $0x20] sm:$0xff]  ;;  %v444_v13 = vld [vmem:[#allocation6 + $0x18] sm:$0xff]  ;;  %728 = vst [vmem:[#allocation2 + $0x1e8] sm:$0x3] %v3766_v58  ;;  %p3686_p10 = scmp.ne.s32.totalorder %s4340_s29, %s3685_s26  ;;  %p4502_p12 = scmp.ne.s32.totalorder %s4448_s19, 0 }
  0x7a   : > { %2869 = vmatprep.subr.mxu0 %v454_v2  ;;  %v443_v14 = vld [vmem:[#allocation6 + $0x10] sm:$0xff]  ;;  %v442_v15 = vld [vmem:[#allocation6 + $0x8] sm:$0xff]  ;;  %v441_v16 = vld [vmem:[#allocation6] sm:$0xff]  ;;  %749 = vst [vmem:[#allocation2 + $0xb0] sm:$0x1] %v3766_v58  ;;  %s3767_s13 = smov [#allocation12]  }
  0x7b   : > { %2870 = vmatpush3.msra.mxu0 %v454_v2  ;;  %v410_v17 = vld [vmem:[%s3982_s24 + $0x8] sm:$0xff]  ;;  %v411_v18 = vld [vmem:[%s3982_s24 + $0x10] sm:$0xff]  ;;  %v412_v19 = vld [vmem:[%s3982_s24 + $0x18] sm:$0xff]  ;;  %750 = vst [vmem:[#allocation2 + $0xc0] sm:$0x1] %v3766_v58  ;;  %p3687_p7 = pnand %p3686_p10, %p4502_p12  ;;  %s3689_s27 = sshll.u32 %s3767_s13, 4  ;;  %s3690_s27 = int_to_ptr.vmem [resolvable:$false] %s3689_s27 }
  0x7c   : > { %2871 = vmatprep.subr.mxu0 %v453_v3  ;;  %v413_v20 = vld [vmem:[%s3982_s24 + $0x20] sm:$0xff]  ;;  %v414_v21 = vld [vmem:[%s3982_s24 + $0x28] sm:$0xff]  ;;  %v415_v22 = vld [vmem:[%s3982_s24 + $0x30] sm:$0xff]  ;;  %751 = vst [vmem:[#allocation2 + $0xd0] sm:$0x1] %v3766_v58  ;;  %s3691_s14 = scalar_lea.vmem %s3690_s27, 2048  ;;  %p3692_p13 = scmp.lt.s32.totalorder %s4340_s29, %s3690_s27 }
  0x7d   : > { %2872 = vmatpush3.msra.mxu0 %v453_v3  ;;  %v416_v23 = vld [vmem:[%s3982_s24 + $0x38] sm:$0xff]  ;;  %v417_v24 = vld [vmem:[%s3982_s24 + $0x40] sm:$0xff]  ;;  %v418_v25 = vld [vmem:[%s3982_s24 + $0x48] sm:$0xff]  ;;  %752 = vst [vmem:[#allocation2 + $0xe0] sm:$0x1] %v3766_v58  ;;  %p3688_p1 = pneg %p3687_p7  ;;  %p3693_p0 = scmp.lt.s32.totalorder %s3691_s14, %s3685_s26 }
  0x7e   : > { %2873 = vmatprep.subr.mxu0 %v452_v5  ;;  %v419_v26 = vld [vmem:[%s3982_s24 + $0x50] sm:$0xff]  ;;  %v420_v27 = vld [vmem:[%s3982_s24 + $0x58] sm:$0xff]  ;;  %v421_v28 = vld [vmem:[%s3982_s24 + $0x60] sm:$0xff]  ;;  %753 = vst [vmem:[#allocation2 + $0xf0] sm:$0x1] %v3766_v58 }
  0x7f   : > { %2874 = vmatpush3.msra.mxu0 %v452_v5  ;;  %v422_v29 = vld [vmem:[%s3982_s24 + $0x68] sm:$0xff]  ;;  %v423_v30 = vld [vmem:[%s3982_s24 + $0x70] sm:$0xff]  ;;  %v424_v31 = vld [vmem:[%s3982_s24 + $0x78] sm:$0xff]  ;;  %754 = vst [vmem:[#allocation2 + $0x100] sm:$0x1] %v3766_v58  ;;  %p3694_p11 = por %p3693_p0, %p3692_p13 }
  0x80   : > { %2875 = vmatprep.subr.mxu0 %v451_v6  ;;  %v425_v32 = vld [vmem:[%s3982_s24 + $0x80] sm:$0xff]  ;;  %v426_v33 = vld [vmem:[%s3982_s24 + $0x88] sm:$0xff]  ;;  %v427_v34 = vld [vmem:[%s3982_s24 + $0x90] sm:$0xff]  ;;  %755 = vst [vmem:[#allocation2 + $0x110] sm:$0x1] %v3766_v58 }
  0x81   : > { %2876 = vmatpush3.msra.mxu0 %v451_v6  ;;  %v428_v35 = vld [vmem:[%s3982_s24 + $0x98] sm:$0xff]  ;;  %v429_v36 = vld [vmem:[%s3982_s24 + $0xa0] sm:$0xff]  ;;  %v430_v37 = vld [vmem:[%s3982_s24 + $0xa8] sm:$0xff]  ;;  %756 = vst [vmem:[#allocation2 + $0x120] sm:$0x1] %v3766_v58  ;;  %p3695_p5 = pnand %p3694_p11, %p3688_p1 }
  0x82   : > { %2877 = vmatprep.subr.mxu0 %v450_v7  ;;  %v431_v38 = vld [vmem:[%s3982_s24 + $0xb0] sm:$0xff]  ;;  %v432_v39 = vld [vmem:[%s3982_s24 + $0xb8] sm:$0xff]  ;;  %v433_v40 = vld [vmem:[%s3982_s24 + $0xc0] sm:$0xff]  ;;  %769 = vst [vmem:[#allocation2 + $0x1f0] sm:$0x1] %v3766_v58 }
  0x83   : > { %2878 = vmatpush3.msra.mxu0 %v450_v7  ;;  %v434_v41 = vld [vmem:[%s3982_s24 + $0xc8] sm:$0xff]  ;;  %v435_v42 = vld [vmem:[%s3982_s24 + $0xd0] sm:$0xff]  ;;  %v436_v43 = vld [vmem:[%s3982_s24 + $0xd8] sm:$0xff]  ;;  %770 = vst [vmem:[#allocation2 + $0x200] sm:$0x1] %v3766_v58 }
  0x84   : > { %2879 = vmatprep.subr.mxu0 %v449_v8  ;;  %v437_v44 = vld [vmem:[%s3982_s24 + $0xe0] sm:$0xff]  ;;  %v438_v45 = vld [vmem:[%s3982_s24 + $0xe8] sm:$0xff]  ;;  %v439_v46 = vld [vmem:[%s3982_s24 + $0xf0] sm:$0xff]  ;;  %771 = vst [vmem:[#allocation2 + $0x210] sm:$0x1] %v3766_v58 }
  0x85   : > { %2880 = vmatpush3.msra.mxu0 %v449_v8  ;;  %v440_v47 = vld [vmem:[%s3982_s24 + $0xf8] sm:$0xff]  ;;  %v900_v49 = vld [vmem:[#allocation8 + $0xf0] sm:$0xff]  ;;  %v899_v50 = vld [vmem:[#allocation8 + $0xe8] sm:$0xff]  ;;  %772 = vst [vmem:[#allocation2 + $0x220] sm:$0x1] %v3766_v58 }
  0x86   : > { %2881 = vmatprep.subr.mxu0 %v448_v9  ;;  %v901_v48 = vld [vmem:[#allocation8 + $0xf8] sm:$0xff]  ;;  %v898_v51 = vld [vmem:[#allocation8 + $0xe0] sm:$0xff]  ;;  %v896_v53 = vld [vmem:[#allocation8 + $0xd0] sm:$0xff]  ;;  %773 = vst [vmem:[#allocation2 + $0x230] sm:$0x1] %v3766_v58 }
  0x87   : > { %2882 = vmatpush3.msra.mxu0 %v448_v9  ;;  %2945 = vmatprep.subr.mxu1 %v901_v48  ;;  %v897_v52 = vld [vmem:[#allocation8 + $0xd8] sm:$0xff]  ;;  %v895_v54 = vld [vmem:[#allocation8 + $0xc8] sm:$0xff]  ;;  %v894_v55 = vld [vmem:[#allocation8 + $0xc0] sm:$0xff]  ;;  %774 = vst [vmem:[#allocation2 + $0x240] sm:$0x1] %v3766_v58 }
  0x88   : > { %2883 = vmatprep.subr.mxu0 %v447_v10  ;;  %2946 = vmatpush3.msra.mxu1 %v901_v48  ;;  %v1136_v56 = vld [vmem:[#allocation8 + $0x178] sm:$0xff]  ;;  %775 = vst [vmem:[#allocation2 + $0x250] sm:$0x1] %v3766_v58  ;;  %776 = vst [vmem:[#allocation2 + $0x260] sm:$0x1] %v3766_v58  ;;  %v1135_v59 = vld [vmem:[#allocation8 + $0x170] sm:$0xff] }
  0x89   : > { %2884 = vmatpush3.msra.mxu0 %v447_v10  ;;  %2947 = vmatprep.subr.mxu1 %v900_v49  ;;  %v893_v57 = vld [vmem:[#allocation8 + $0xb8] sm:$0xff]  ;;  %768 = vst [vmem:[#allocation2 + $0x1e0] sm:$0x1] %v3766_v58  ;;  %v892_v60 = vld [vmem:[#allocation8 + $0xb0] sm:$0xff]  ;;  %v1134_v61 = vld [vmem:[#allocation8 + $0x168] sm:$0xff] }
  0x8a   : > { %2885 = vmatprep.subr.mxu0 %v446_v11  ;;  %2948 = vmatpush3.msra.mxu1 %v900_v49  ;;  %v891_v62 = vld [vmem:[#allocation8 + $0xa8] sm:$0xff]  ;;  %v1133_v63 = vld [vmem:[#allocation8 + $0x160] sm:$0xff]  ;;  %v1132_v1 = vld [vmem:[#allocation8 + $0x158] sm:$0xff] }
  0x8b   : > { %2886 = vmatpush3.msra.mxu0 %v446_v11  ;;  %2949 = vmatprep.subr.mxu1 %v899_v50  ;;  %v890_v0 = vld [vmem:[#allocation8 + $0xa0] sm:$0xff]  ;;  %v889_v2 = vld [vmem:[#allocation8 + $0x98] sm:$0xff]  ;;  %v1131_v3 = vld [vmem:[#allocation8 + $0x150] sm:$0xff] }
  0x8c   : > { %2887 = vmatprep.subr.mxu0 %v445_v12  ;;  %2950 = vmatpush3.msra.mxu1 %v899_v50  ;;  %v888_v4 = vld [vmem:[#allocation8 + $0x90] sm:$0xff]  ;;  %v1130_v5 = vld [vmem:[#allocation8 + $0x148] sm:$0xff]  ;;  %v886_v7 = vld [vmem:[#allocation8 + $0x80] sm:$0xff] }
  0x8d   : > { %2888 = vmatpush3.msra.mxu0 %v445_v12  ;;  %2951 = vmatprep.subr.mxu1 %v898_v51  ;;  %v887_v6 = vld [vmem:[#allocation8 + $0x88] sm:$0xff]  ;;  %v1129_v8 = vld [vmem:[#allocation8 + $0x140] sm:$0xff]  ;;  %v4028_v10 = vld [vmem:[#allocation8 + $0x78] sm:$0xff] }
  0x8e   : > { %2889 = vmatprep.subr.mxu0 %v444_v13  ;;  %2952 = vmatpush3.msra.mxu1 %v898_v51  ;;  %v877_v9 = vld [vmem:[#allocation2 + $0x141] sm:$0xff]  ;;  %v1128_v11 = vld [vmem:[#allocation8 + $0x138] sm:$0xff]  ;;  %v1127_v12 = vld [vmem:[#allocation8 + $0x130] sm:$0xff] }
  0x8f   : > { %2890 = vmatpush3.msra.mxu0 %v444_v13  ;;  %2953 = vmatprep.subr.mxu1 %v897_v52  ;;  %v1126_v13 = vld [vmem:[#allocation8 + $0x128] sm:$0xff] }
  0x90   : > { %2891 = vmatprep.subr.mxu0 %v443_v14  ;;  %2954 = vmatpush3.msra.mxu1 %v897_v52 }
  0x91   : > { %2892 = vmatpush3.msra.mxu0 %v443_v14  ;;  %2955 = vmatprep.subr.mxu1 %v896_v53  ;;  %v1125_v14 = vld [vmem:[#allocation8 + $0x120] sm:$0xff] }
  0x92   : > { %2893 = vmatprep.subr.mxu0 %v442_v15  ;;  %2956 = vmatpush3.msra.mxu1 %v896_v53 }
  0x93   : > { %2894 = vmatpush3.msra.mxu0 %v442_v15  ;;  %2957 = vmatprep.subr.mxu1 %v895_v54  ;;  %v1124_v15 = vld [vmem:[#allocation8 + $0x118] sm:$0xff] }
  0x94   : > { %2895 = vmatprep.subr.mxu0 %v441_v16  ;;  %2958 = vmatpush3.msra.mxu1 %v895_v54 }
  0x95   : > { %2896 = vmatpush3.msra.mxu0 %v441_v16  ;;  %2959 = vmatprep.subr.mxu1 %v894_v55  ;;  %v1123_v16 = vld [vmem:[#allocation8 + $0x110] sm:$0xff] }
  0x96   : > { %2898 = vmatmul.mubr.f32.vlgmr.msra.gmra.mxu0 %v410_v17  ;;  %2960 = vmatpush3.msra.mxu1 %v894_v55  ;;  %v1122_v17 = vld [vmem:[#allocation8 + $0x108] sm:$0xff] }
  0x97   : > { %2900 = vmatprep.mubr.f32.mxu0 %v411_v18  ;;  %3033 = vmatprep.subr.mxu0 %v1136_v56  ;;  %v1121_v18 = vld [vmem:[#allocation8 + $0x100] sm:$0xff] }
  0x98   : > { %2961 = vmatprep.subr.mxu1 %v893_v57  ;;  %3034 = vmatpush3.msra.mxu0 %v1136_v56 }
  0x99   : > { %2962 = vmatpush3.msra.mxu1 %v893_v57  ;;  %3035 = vmatprep.subr.mxu0 %v1135_v59 }
  0x9a   : > { %2901 = vmatmul.mubr.f32.gmra.mxu0 %v412_v19  ;;  %2963 = vmatprep.subr.mxu1 %v892_v60  ;;  %v1112_v19 = vld [vmem:[#allocation2 + $0x1e1] sm:$0xff] }
  0x9b   : > { %2903 = vmatprep.mubr.f32.mxu0 %v413_v20  ;;  %3036 = vmatpush3.msra.mxu0 %v1135_v59  ;;  %v4031_v20 = vld [vmem:[#allocation8 + $0x278] sm:$0xff] }
  0x9c   : > { %2964 = vmatpush3.msra.mxu1 %v892_v60  ;;  %3037 = vmatprep.subr.mxu0 %v1134_v61 }
  0x9d   : > { %2965 = vmatprep.subr.mxu1 %v891_v62  ;;  %3038 = vmatpush3.msra.mxu0 %v1134_v61 }
  0x9e   : > { %2904 = vmatmul.mubr.f32.gmra.mxu0 %v414_v21  ;;  %2966 = vmatpush3.msra.mxu1 %v891_v62  ;;  %v4037_v21 = vld [vmem:[%s4393_s2] ss:$0 sm:$0xff] }
  0x9f   : > { %2906 = vmatprep.mubr.f32.mxu0 %v415_v22  ;;  %3039 = vmatprep.subr.mxu0 %v1133_v63 }
  0xa0   : > { %2967 = vmatprep.subr.mxu1 %v890_v0  ;;  %3040 = vmatpush3.msra.mxu0 %v1133_v63 }
  0xa1   : > { %2968 = vmatpush3.msra.mxu1 %v890_v0  ;;  %3041 = vmatprep.subr.mxu0 %v1132_v1 }
  0xa2   : > { %2907 = vmatmul.mubr.f32.gmra.mxu0 %v416_v23  ;;  %2969 = vmatprep.subr.mxu1 %v889_v2 }
  0xa3   : > { %2909 = vmatprep.mubr.f32.mxu0 %v417_v24  ;;  %3042 = vmatpush3.msra.mxu0 %v1132_v1 }
  0xa4   : > { %2970 = vmatpush3.msra.mxu1 %v889_v2  ;;  %3043 = vmatprep.subr.mxu0 %v1131_v3 }
  0xa5   : > { %2971 = vmatprep.subr.mxu1 %v888_v4  ;;  %3044 = vmatpush3.msra.mxu0 %v1131_v3 }
  0xa6   : > { %2910 = vmatmul.mubr.f32.gmra.mxu0 %v418_v25  ;;  %2972 = vmatpush3.msra.mxu1 %v888_v4 }
  0xa7   : > { %2912 = vmatprep.mubr.f32.mxu0 %v419_v26  ;;  %3045 = vmatprep.subr.mxu0 %v1130_v5 }
  0xa8   : > { %2973 = vmatprep.subr.mxu1 %v887_v6  ;;  %3046 = vmatpush3.msra.mxu0 %v1130_v5 }
  0xa9   : > { %2974 = vmatpush3.msra.mxu1 %v887_v6  ;;  %3047 = vmatprep.subr.mxu0 %v1129_v8 }
  0xaa   : > { %2913 = vmatmul.mubr.f32.gmra.mxu0 %v420_v27  ;;  %2975 = vmatprep.subr.mxu1 %v886_v7 }
  0xab   : > { %2915 = vmatprep.mubr.f32.mxu0 %v421_v28  ;;  %2976 = vmatpush3.msra.mxu1 %v886_v7 }
  0xac   : > { %3048 = vmatpush3.msra.mxu0 %v1129_v8  ;;  %2977 = vmatprep.mubr.f32.mxu1 %v877_v9 }
  0xad   : > { %2989 = vmatprep.subr.mxu1 %v4028_v10  ;;  %3049 = vmatprep.subr.mxu0 %v1128_v11 }
  0xae   : > { %2916 = vmatmul.mubr.f32.gmra.mxu0 %v422_v29 }
  0xaf   : > { %2918 = vmatprep.mubr.f32.mxu0 %v423_v30  ;;  %3050 = vmatpush3.msra.mxu0 %v1128_v11 }
  0xb0   : > { %3051 = vmatprep.subr.mxu0 %v1127_v12 }
  0xb1   : > { %3052 = vmatpush3.msra.mxu0 %v1127_v12 }
  0xb2   : > { %2919 = vmatmul.mubr.f32.gmra.mxu0 %v424_v31  ;;  %3053 = vmatprep.subr.mxu0 %v1126_v13 }
  0xb3   : > { %2921 = vmatprep.mubr.f32.mxu0 %v425_v32  ;;  %3054 = vmatpush3.msra.mxu0 %v1126_v13 }
  0xb4   : > { %3055 = vmatprep.subr.mxu0 %v1125_v14 }
  0xb5   : > { %3056 = vmatpush3.msra.mxu0 %v1125_v14 }
  0xb6   : > { %2922 = vmatmul.mubr.f32.gmra.mxu0 %v426_v33  ;;  %3057 = vmatprep.subr.mxu0 %v1124_v15 }
  0xb7   : > { %2924 = vmatprep.mubr.f32.mxu0 %v427_v34  ;;  %3058 = vmatpush3.msra.mxu0 %v1124_v15 }
  0xb8   : > { %3059 = vmatprep.subr.mxu0 %v1123_v16 }
  0xb9   : > { %3060 = vmatpush3.msra.mxu0 %v1123_v16  ;;  %v874_v16 = vld [vmem:[#allocation8 + $0x70] sm:$0xff] }
  0xba   : > { %2925 = vmatmul.mubr.f32.gmra.mxu0 %v428_v35  ;;  %3061 = vmatprep.subr.mxu0 %v1122_v17 }
  0xbb   : > { %2927 = vmatprep.mubr.f32.mxu0 %v429_v36  ;;  %3062 = vmatpush3.msra.mxu0 %v1122_v17 }
  0xbc   : > { %3063 = vmatprep.subr.mxu0 %v1121_v18 }
  0xbd   : > { %3064 = vmatpush3.msra.mxu0 %v1121_v18 }
  0xbe   : > { %2928 = vmatmul.mubr.f32.gmra.mxu0 %v430_v37  ;;  %3121 = vmatprep.subr.mxu0 %v4031_v20 }
  0xbf   : > { %2930 = vmatprep.mubr.f32.mxu0 %v431_v38 }
  0xc2   : > { %2931 = vmatmul.mubr.f32.gmra.mxu0 %v432_v39 }
  0xc3   : > { %2933 = vmatprep.mubr.f32.mxu0 %v433_v40 }
  0xc6   : > { %2934 = vmatmul.mubr.f32.gmra.mxu0 %v434_v41 }
  0xc7   : > { %2936 = vmatprep.mubr.f32.mxu0 %v435_v42 }
  0xca   : > { %2937 = vmatmul.mubr.f32.gmra.mxu0 %v436_v43 }
  0xcb   : > { %2939 = vmatprep.mubr.f32.mxu0 %v437_v44 }
  0xce   : > { %2940 = vmatmul.mubr.f32.gmra.mxu0 %v438_v45 }
  0xcf   : > { %2942 = vmatprep.mubr.f32.mxu0 %v439_v46 }
  0xd2   : > { %2943 = vmatmul.mubr.f32.gmra.mxu0 %v440_v47 }
  0xd3   : > { %3065 = vmatprep.mubr.f32.mxu0 %v1112_v19 }
 0x156   : > { %v2899_v22 = vpop.f32.mrf.mxu0 }
 0x157   : > { %v4040_v23 = vadd.f32 %v2899_v22, %v4037_v21  ;;  %v873_v22 = vld [vmem:[#allocation8 + $0x68] sm:$0xff] }
 0x158   : > { %v530_v24 = vpop.f32.mrf.mxu0 }
 0x159   : > { %v690_v25 = vmax.f32 %v4040_v23, 0.0  ;;  %v4044_v26 = vadd.f32 %v4037_v21, %v530_v24  ;;  %v1687_v23 = vld [vmem:[#allocation8 + $0x360] sm:$0xff] }
 0x15a   : > { %v2902_v27 = vpop.f32.mrf.mxu0 }
 0x15b   : > { %v689_v28 = vmax.f32 %v4044_v26, 0.0  ;;  %v4048_v29 = vadd.f32 %v2902_v27, %v4037_v21  ;;  %v1273_v26 = vld [vmem:[#allocation8 + $0x1e8] sm:$0xff] }
 0x15c   : > { %v540_v30 = vpop.f32.mrf.mxu0 }
 0x15d   : > { %v692_v31 = vmax.f32 %v4048_v29, 0.0  ;;  %v4052_v32 = vadd.f32 %v4037_v21, %v540_v30  ;;  %v1685_v29 = vld [vmem:[#allocation8 + $0x350] sm:$0xff] }
 0x15e   : > { %v2905_v33 = vpop.f32.mrf.mxu0 }
 0x15f   : > { %v691_v34 = vmax.f32 %v4052_v32, 0.0  ;;  %v4056_v35 = vadd.f32 %v2905_v33, %v4037_v21  ;;  %v872_v33 = vld [vmem:[#allocation8 + $0x60] sm:$0xff]  ;;  %v1686_v32 = vld [vmem:[#allocation8 + $0x358] sm:$0xff] }
 0x160   : > { %v550_v36 = vpop.f32.mrf.mxu0 }
 0x161   : > { %v694_v37 = vmax.f32 %v4056_v35, 0.0  ;;  %v4060_v38 = vadd.f32 %v4037_v21, %v550_v36  ;;  %v1683_v35 = vld [vmem:[#allocation8 + $0x340] sm:$0xff] }
 0x162   : > { %v2908_v39 = vpop.f32.mrf.mxu0 }
 0x163   : > { %v693_v40 = vmax.f32 %v4060_v38, 0.0  ;;  %v566_v41 = vadd.f32 %v2908_v39, %v4037_v21  ;;  %v1684_v38 = vld [vmem:[#allocation8 + $0x348] sm:$0xff] }
 0x164   : > { %v560_v42 = vpop.f32.mrf.mxu0 }
 0x165   : > { %v696_v43 = vmax.f32 %v566_v41, 0.0  ;;  %v4065_v44 = vadd.f32 %v4037_v21, %v560_v42  ;;  %v871_v42 = vld [vmem:[#allocation8 + $0x58] sm:$0xff] }
 0x166   : > { %v2911_v45 = vpop.f32.mrf.mxu0 }
 0x167   : > { %826 = vst [vmem:[#allocation2 + $0x81] sm:$0xff] %v696_v43  ;;  %v695_v46 = vmax.f32 %v4065_v44, 0.0  ;;  %v576_v47 = vadd.f32 %v2911_v45, %v4037_v21  ;;  %v1682_v44 = vld [vmem:[#allocation8 + $0x338] sm:$0xff] }
 0x168   : > { %v570_v48 = vpop.f32.mrf.mxu0 }
 0x169   : > { %v698_v49 = vmax.f32 %v576_v47, 0.0  ;;  %v571_v50 = vadd.f32 %v4037_v21, %v570_v48  ;;  %v870_v47 = vld [vmem:[#allocation8 + $0x50] sm:$0xff] }
 0x16a   : > { %v2914_v51 = vpop.f32.mrf.mxu0 }
 0x16b   : > { %828 = vst [vmem:[#allocation2 + $0xc1] sm:$0xff] %v698_v49  ;;  %v697_v52 = vmax.f32 %v571_v50, 0.0  ;;  %v586_v53 = vadd.f32 %v2914_v51, %v4037_v21  ;;  %v869_v51 = vld [vmem:[#allocation8 + $0x48] sm:$0xff] }
 0x16c   : > { %v580_v54 = vpop.f32.mrf.mxu0 }
 0x16d   : > { %827 = vst [vmem:[#allocation2 + $0xb1] sm:$0xff] %v697_v52  ;;  %v700_v55 = vmax.f32 %v586_v53, 0.0  ;;  %v581_v56 = vadd.f32 %v4037_v21, %v580_v54  ;;  %v852_v54 = vld [vmem:[#allocation2 + $0x1e0] sm:$0xff] }
 0x16e   : > { %v2917_v57 = vpop.f32.mrf.mxu0 }
 0x16f   : > { %830 = vst [vmem:[#allocation2 + $0xe1] sm:$0xff] %v700_v55  ;;  %v699_v58 = vmax.f32 %v581_v56, 0.0  ;;  %v596_v59 = vadd.f32 %v2917_v57, %v4037_v21  ;;  %v868_v56 = vld [vmem:[#allocation8 + $0x40] sm:$0xff] }
 0x170   : > { %v590_v60 = vpop.f32.mrf.mxu0 }
 0x171   : > { %829 = vst [vmem:[#allocation2 + $0xd1] sm:$0xff] %v699_v58  ;;  %v702_v61 = vmax.f32 %v596_v59, 0.0  ;;  %v591_v62 = vadd.f32 %v4037_v21, %v590_v60  ;;  %v867_v60 = vld [vmem:[#allocation8 + $0x38] sm:$0xff] }
 0x172   : > { %v2920_v63 = vpop.f32.mrf.mxu0 }
 0x173   : > { %832 = vst [vmem:[#allocation2 + $0x101] sm:$0xff] %v702_v61  ;;  %v701_v0 = vmax.f32 %v591_v62, 0.0  ;;  %v606_v1 = vadd.f32 %v2920_v63, %v4037_v21 }
 0x174   : > { %v600_v2 = vpop.f32.mrf.mxu0 }
 0x175   : > { %831 = vst [vmem:[#allocation2 + $0xf1] sm:$0xff] %v701_v0  ;;  %v704_v3 = vmax.f32 %v606_v1, 0.0  ;;  %v601_v4 = vadd.f32 %v4037_v21, %v600_v2  ;;  %v866_v0 = vld [vmem:[#allocation8 + $0x30] sm:$0xff] }
 0x176   : > { %v2923_v5 = vpop.f32.mrf.mxu0  ;;  %v1412_v1 = vld [vmem:[#allocation8 + $0x270] sm:$0xff] }
 0x177   : > { %834 = vst [vmem:[#allocation2 + $0x121] sm:$0xff] %v704_v3  ;;  %v703_v6 = vmax.f32 %v601_v4, 0.0  ;;  %v616_v7 = vadd.f32 %v2923_v5, %v4037_v21  ;;  %v865_v5 = vld [vmem:[#allocation8 + $0x28] sm:$0xff] }
 0x178   : > { %v610_v8 = vpop.f32.mrf.mxu0 }
 0x179   : > { %833 = vst [vmem:[#allocation2 + $0x111] sm:$0xff] %v703_v6  ;;  %v706_v9 = vmax.f32 %v616_v7, 0.0  ;;  %v611_v11 = vadd.f32 %v4037_v21, %v610_v8  ;;  %v1411_v8 = vld [vmem:[#allocation8 + $0x268] sm:$0xff] }
 0x17a   : > { %v2926_v12 = vpop.f32.mrf.mxu0 }
 0x17b   : > { %836 = vst [vmem:[#allocation2 + $0x161] sm:$0xff] %v706_v9  ;;  %v705_v13 = vmax.f32 %v611_v11, 0.0  ;;  %v626_v14 = vadd.f32 %v2926_v12, %v4037_v21  ;;  %v864_v11 = vld [vmem:[#allocation8 + $0x20] sm:$0xff] }
 0x17c   : > { %v620_v15 = vpop.f32.mrf.mxu0 }
 0x17d   : > { %835 = vst [vmem:[#allocation2 + $0x151] sm:$0xff] %v705_v13  ;;  %v708_v17 = vmax.f32 %v626_v14, 0.0  ;;  %v621_v18 = vadd.f32 %v4037_v21, %v620_v15  ;;  %2978 = vmatmul.mubr.f32.vlgmr.msra.gmra.mxu1 %v705_v13  ;;  %v1410_v14 = vld [vmem:[#allocation8 + $0x260] sm:$0xff]  ;;  %v863_v15 = vld [vmem:[#allocation8 + $0x18] sm:$0xff] }
 0x17e   : > { %v2929_v19 = vpop.f32.mrf.mxu0  ;;  %2990 = vmatpush3.msra.mxu1 %v4028_v10  ;;  %2980 = vmatprep.mubr.f32.mxu1 %v706_v9 }
 0x17f   : > { %838 = vst [vmem:[#allocation2 + $0x181] sm:$0xff] %v708_v17  ;;  %v707_v24 = vmax.f32 %v621_v18, 0.0  ;;  %v636_v27 = vadd.f32 %v2929_v19, %v4037_v21  ;;  %2991 = vmatprep.subr.mxu1 %v874_v16  ;;  %v1409_v19 = vld [vmem:[#allocation8 + $0x258] sm:$0xff] }
 0x180   : > { %v630_v30 = vpop.f32.mrf.mxu0  ;;  %2992 = vmatpush3.msra.mxu1 %v874_v16 }
 0x181   : > { %837 = vst [vmem:[#allocation2 + $0x171] sm:$0xff] %v707_v24  ;;  %v710_v36 = vmax.f32 %v636_v27, 0.0  ;;  %v631_v39 = vadd.f32 %v4037_v21, %v630_v30  ;;  %2993 = vmatprep.subr.mxu1 %v873_v22  ;;  %2981 = vmatmul.mubr.f32.gmra.mxu1 %v707_v24  ;;  %v862_v27 = vld [vmem:[#allocation8 + $0x10] sm:$0xff] }
 0x182   : > { %v2932_v41 = vpop.f32.mrf.mxu0  ;;  %2994 = vmatpush3.msra.mxu1 %v873_v22  ;;  %2983 = vmatprep.mubr.f32.mxu1 %v708_v17 }
 0x183   : > { %840 = vst [vmem:[#allocation2 + $0x1a1] sm:$0xff] %v710_v36  ;;  %v709_v10 = vmax.f32 %v631_v39, 0.0  ;;  %v646_v43 = vadd.f32 %v2932_v41, %v4037_v21  ;;  %2995 = vmatprep.subr.mxu1 %v872_v33  ;;  %v860_v39 = vld [vmem:[#allocation8] sm:$0xff] }
 0x184   : > { %v640_v45 = vpop.f32.mrf.mxu0  ;;  %2996 = vmatpush3.msra.mxu1 %v872_v33  ;;  %v1408_v33 = vld [vmem:[#allocation8 + $0x250] sm:$0xff]  ;;  %v1406_v41 = vld [vmem:[#allocation8 + $0x240] sm:$0xff] }
 0x185   : > { %839 = vst [vmem:[#allocation2 + $0x191] sm:$0xff] %v709_v10  ;;  %v712_v48 = vmax.f32 %v646_v43, 0.0  ;;  %v641_v49 = vadd.f32 %v4037_v21, %v640_v45  ;;  %2997 = vmatprep.subr.mxu1 %v871_v42  ;;  %2984 = vmatmul.mubr.f32.gmra.mxu1 %v709_v10  ;;  %v1275_v10 = vld [vmem:[#allocation8 + $0x1f8] sm:$0xff]  ;;  %v1274_v45 = vld [vmem:[#allocation8 + $0x1f0] sm:$0xff] }
 0x186   : > { %v2935_v50 = vpop.f32.mrf.mxu0  ;;  %2998 = vmatpush3.msra.mxu1 %v871_v42  ;;  %2986 = vmatprep.mubr.f32.mxu1 %v710_v36  ;;  %v861_v36 = vld [vmem:[#allocation8 + $0x8] sm:$0xff]  ;;  %v1405_v43 = vld [vmem:[#allocation8 + $0x238] sm:$0xff] }
 0x187   : > { %842 = vst [vmem:[#allocation2 + $0x1c1] sm:$0xff] %v712_v48  ;;  %v711_v52 = vmax.f32 %v641_v49, 0.0  ;;  %v656_v53 = vadd.f32 %v2935_v50, %v4037_v21  ;;  %2999 = vmatprep.subr.mxu1 %v870_v47  ;;  %v1404_v48 = vld [vmem:[#allocation8 + $0x230] sm:$0xff]  ;;  %v1272_v50 = vld [vmem:[#allocation8 + $0x1e0] sm:$0xff] }
 0x188   : > { %v650_v55 = vpop.f32.mrf.mxu0  ;;  %3000 = vmatpush3.msra.mxu1 %v870_v47 }
 0x189   : > { %841 = vst [vmem:[#allocation2 + $0x1b1] sm:$0xff] %v711_v52  ;;  %v4086_v57 = vmax.f32 %v656_v53, 0.0  ;;  %v651_v58 = vadd.f32 %v4037_v21, %v650_v55  ;;  %3001 = vmatprep.subr.mxu1 %v869_v51  ;;  %2987 = vmatmul.mubr.f32.gmra.mxu1 %v711_v52  ;;  %v1401_v55 = vld [vmem:[#allocation8 + $0x218] sm:$0xff] }
 0x18a   : > { %v2938_v59 = vpop.f32.mrf.mxu0  ;;  %3002 = vmatpush3.msra.mxu1 %v869_v51  ;;  %3021 = vmatprep.mubr.f32.mxu1 %v852_v54  ;;  %v1402_v51 = vld [vmem:[#allocation8 + $0x220] sm:$0xff]  ;;  %v1271_v54 = vld [vmem:[#allocation8 + $0x1d8] sm:$0xff] }
 0x18b   : > { %844 = vst [vmem:[#allocation2 + $0x201] sm:$0xff] %v4086_v57  ;;  %v4090_v61 = vmax.f32 %v651_v58, 0.0  ;;  %v666_v62 = vadd.f32 %v2938_v59, %v4037_v21  ;;  %3003 = vmatprep.subr.mxu1 %v868_v56  ;;  %v1400_v58 = vld [vmem:[#allocation8 + $0x210] sm:$0xff] }
 0x18c   : > { %v660_v63 = vpop.f32.mrf.mxu0  ;;  %3004 = vmatpush3.msra.mxu1 %v868_v56  ;;  %v1270_v56 = vld [vmem:[#allocation8 + $0x1d0] sm:$0xff] }
 0x18d   : > { %843 = vst [vmem:[#allocation2 + $0x1f1] sm:$0xff] %v4090_v61  ;;  %v4094_v2 = vmax.f32 %v666_v62, 0.0  ;;  %v661_v3 = vadd.f32 %v4037_v21, %v660_v63  ;;  %3005 = vmatprep.subr.mxu1 %v867_v60  ;;  %3066 = vmatmul.mubr.f32.vlgmr.msra.gmra.mxu0 %v4090_v61  ;;  %v1269_v62 = vld [vmem:[#allocation8 + $0x1c8] sm:$0xff] }
 0x18e   : > { %v2941_v4 = vpop.f32.mrf.mxu0  ;;  %3006 = vmatpush3.msra.mxu1 %v867_v60  ;;  %3122 = vmatpush3.msra.mxu0 %v4031_v20  ;;  %v1399_v63 = vld [vmem:[#allocation8 + $0x208] sm:$0xff] }
 0x18f   : > { %846 = vst [vmem:[#allocation2 + $0x221] sm:$0xff] %v4094_v2  ;;  %v4100_v6 = vmax.f32 %v661_v3, 0.0  ;;  %v676_v7 = vadd.f32 %v2941_v4, %v4037_v21  ;;  %3007 = vmatprep.subr.mxu1 %v866_v0  ;;  %3123 = vmatprep.subr.mxu0 %v1412_v1  ;;  %v1398_v3 = vld [vmem:[#allocation8 + $0x200] sm:$0xff]  ;;  %v1267_v4 = vld [vmem:[#allocation8 + $0x1b8] sm:$0xff] }
 0x190   : > { %v670_v9 = vpop.f32.mrf.mxu0  ;;  %3008 = vmatpush3.msra.mxu1 %v866_v0  ;;  %3124 = vmatpush3.msra.mxu0 %v1412_v1  ;;  %v1268_v0 = vld [vmem:[#allocation8 + $0x1c0] sm:$0xff]  ;;  %v1251_v1 = vld [vmem:[#allocation2 + $0xb0] sm:$0xff] }
 0x191   : > { %845 = vst [vmem:[#allocation2 + $0x211] sm:$0xff] %v4100_v6  ;;  %v4104_v12 = vmax.f32 %v676_v7, 0.0  ;;  %v671_v20 = vadd.f32 %v4037_v21, %v670_v9  ;;  %3009 = vmatprep.subr.mxu1 %v865_v5  ;;  %3068 = vmatprep.mubr.f32.mxu0 %v4086_v57  ;;  %v1266_v7 = vld [vmem:[#allocation8 + $0x1b0] sm:$0xff]  ;;  %v1265_v9 = vld [vmem:[#allocation8 + $0x1a8] sm:$0xff] }
 0x192   : > { %v2944_v13 = vpop.f32.mrf.mxu0  ;;  %3125 = vmatprep.subr.mxu0 %v1411_v8  ;;  %3010 = vmatpush3.msra.mxu1 %v865_v5  ;;  %v4132_v47 = vld [vmem:[#allocation2 + $0x200] sm:$0xff]  ;;  %v1690_v5 = vld [vmem:[#allocation8 + $0x378] sm:$0xff] }
 0x193   : > { %848 = vst [vmem:[#allocation2 + $0x241] sm:$0xff] %v4104_v12  ;;  %v4109_v16 = vmax.f32 %v671_v20, 0.0  ;;  %v4112_v17 = vadd.f32 %v2944_v13, %v4037_v21  ;;  %3069 = vmatmul.mubr.f32.gmra.mxu0 %v4100_v6  ;;  %3011 = vmatprep.subr.mxu1 %v864_v11  ;;  %v1264_v20 = vld [vmem:[#allocation8 + $0x1a0] sm:$0xff] }
 0x194   : > { %v680_v18 = vpop.f32.mrf.mxu0  ;;  %3126 = vmatpush3.msra.mxu0 %v1411_v8  ;;  %3012 = vmatpush3.msra.mxu1 %v864_v11  ;;  %v4127_v42 = vld [vmem:[#allocation2 + $0x1f0] sm:$0xff]  ;;  %v1688_v11 = vld [vmem:[#allocation8 + $0x368] sm:$0xff]  ;;  %v1260_v13 = vld [vmem:[#allocation8 + $0x180] sm:$0xff] }
 0x195   : > { %847 = vst [vmem:[#allocation2 + $0x231] sm:$0xff] %v4109_v16  ;;  %v720_v22 = vmax.f32 %v4112_v17, 0.0  ;;  %v681_v24 = vadd.f32 %v4037_v21, %v680_v18  ;;  %3127 = vmatprep.subr.mxu0 %v1410_v14  ;;  %3013 = vmatprep.subr.mxu1 %v863_v15  ;;  %v1407_v21 = vld [vmem:[#allocation8 + $0x248] sm:$0xff]  ;;  %v1689_v8 = vld [vmem:[#allocation8 + $0x370] sm:$0xff] }
 0x196   : > { %3128 = vmatpush3.msra.mxu0 %v1410_v14  ;;  %3071 = vmatprep.mubr.f32.mxu0 %v4094_v2  ;;  %v4138_v52 = vld [vmem:[#allocation2 + $0x220] sm:$0xff]  ;;  %v1550_v14 = vld [vmem:[#allocation8 + $0x2f0] sm:$0xff] }
 0x197   : > { %850 = vst [vmem:[#allocation2 + $0x261] sm:$0xff] %v720_v22  ;;  %v4121_v30 = vmax.f32 %v681_v24, 0.0  ;;  %3129 = vmatprep.subr.mxu0 %v1409_v19  ;;  %3014 = vmatpush3.msra.mxu1 %v863_v15  ;;  %v1253_v15 = vld [vmem:[#allocation2 + $0xd0] sm:$0xff]  ;;  %v1680_v24 = vld [vmem:[#allocation8 + $0x328] sm:$0xff] }
 0x198   : > { %3072 = vmatmul.mubr.f32.gmra.mxu0 %v4109_v16  ;;  %3015 = vmatprep.subr.mxu1 %v862_v27  ;;  %v4135_v49 = vld [vmem:[#allocation2 + $0x210] sm:$0xff] }
 0x199   : > { %849 = vst [vmem:[#allocation2 + $0x251] sm:$0xff] %v4121_v30  ;;  %3130 = vmatpush3.msra.mxu0 %v1409_v19  ;;  %3016 = vmatpush3.msra.mxu1 %v862_v27  ;;  %v1681_v18 = vld [vmem:[#allocation8 + $0x330] sm:$0xff]  ;;  %v1549_v19 = vld [vmem:[#allocation8 + $0x2e8] sm:$0xff]  ;;  %v1254_v27 = vld [vmem:[#allocation2 + $0xe0] sm:$0xff] }
 0x19a   : > { %3131 = vmatprep.subr.mxu0 %v1408_v33  ;;  %3017 = vmatprep.subr.mxu1 %v861_v36  ;;  %v4144_v59 = vld [vmem:[#allocation2 + $0x240] sm:$0xff]  ;;  %v2118_v17 = vld [vmem:[#allocation9 + $0x70] sm:$0xff] }
 0x19b   : > { %3132 = vmatpush3.msra.mxu0 %v1408_v33  ;;  %3074 = vmatprep.mubr.f32.mxu0 %v4104_v12  ;;  %v1548_v33 = vld [vmem:[#allocation8 + $0x2e0] sm:$0xff] }
 0x19c   : > { %3133 = vmatprep.subr.mxu0 %v1407_v21  ;;  %3018 = vmatpush3.msra.mxu1 %v861_v36  ;;  %v4140_v53 = vld [vmem:[#allocation2 + $0x230] sm:$0xff] }
 0x19d   : > { %3075 = vmatmul.mubr.f32.gmra.mxu0 %v4121_v30  ;;  %3019 = vmatprep.subr.mxu1 %v860_v39  ;;  %v1255_v36 = vld [vmem:[#allocation2 + $0xf0] sm:$0xff] }
 0x19e   : > { %3134 = vmatpush3.msra.mxu0 %v1407_v21  ;;  %3153 = vmatprep.mubr.f32.mxu0 %v689_v28  ;;  %v1403_v28 = vld [vmem:[#allocation8 + $0x228] sm:$0xff]  ;;  %v1679_v21 = vld [vmem:[#allocation8 + $0x320] sm:$0xff] }
 0x19f   : > { %3135 = vmatprep.subr.mxu0 %v1406_v41  ;;  %3020 = vmatpush3.msra.mxu1 %v860_v39  ;;  %v1547_v39 = vld [vmem:[#allocation8 + $0x2d8] sm:$0xff] }
 0x1a0   : > { %3136 = vmatpush3.msra.mxu0 %v1406_v41  ;;  %3022 = vmatmul.mubr.f32.vlgmr.msra.gmra.mxu1 %v4127_v42  ;;  %v4146_v60 = vld [vmem:[#allocation2 + $0x250] sm:$0xff]  ;;  %v1678_v41 = vld [vmem:[#allocation8 + $0x318] sm:$0xff] }
 0x1a1   : > { %3077 = vmatprep.subr.mxu1 %v1275_v10  ;;  %3137 = vmatprep.subr.mxu0 %v1405_v43 }
 0x1a2   : > { %3024 = vmatprep.mubr.f32.mxu1 %v4132_v47  ;;  %3078 = vmatpush3.msra.mxu1 %v1275_v10  ;;  %v1546_v10 = vld [vmem:[#allocation8 + $0x2d0] sm:$0xff] }
 0x1a3   : > { %3138 = vmatpush3.msra.mxu0 %v1405_v43  ;;  %3079 = vmatprep.subr.mxu1 %v1274_v45  ;;  %v1257_v43 = vld [vmem:[#allocation2 + $0x110] sm:$0xff] }
 0x1a4   : > { %3139 = vmatprep.subr.mxu0 %v1404_v48  ;;  %3080 = vmatpush3.msra.mxu1 %v1274_v45  ;;  %v1677_v45 = vld [vmem:[#allocation8 + $0x310] sm:$0xff] }
 0x1a5   : > { %3140 = vmatpush3.msra.mxu0 %v1404_v48  ;;  %3025 = vmatmul.mubr.f32.gmra.mxu1 %v4135_v49  ;;  %v1545_v48 = vld [vmem:[#allocation8 + $0x2c8] sm:$0xff] }
 0x1a6   : > { %3081 = vmatprep.subr.mxu1 %v1273_v26  ;;  %3141 = vmatprep.subr.mxu0 %v1403_v28 }
 0x1a7   : > { %3082 = vmatpush3.msra.mxu1 %v1273_v26  ;;  %3142 = vmatpush3.msra.mxu0 %v1403_v28  ;;  %v1676_v26 = vld [vmem:[#allocation8 + $0x308] sm:$0xff]  ;;  %v1258_v28 = vld [vmem:[#allocation2 + $0x120] sm:$0xff] }
 0x1a8   : > { %3083 = vmatprep.subr.mxu1 %v1272_v50  ;;  %3143 = vmatprep.subr.mxu0 %v1402_v51 }
 0x1a9   : > { %3027 = vmatprep.mubr.f32.mxu1 %v4138_v52  ;;  %3084 = vmatpush3.msra.mxu1 %v1272_v50  ;;  %v1544_v50 = vld [vmem:[#allocation8 + $0x2c0] sm:$0xff] }
 0x1aa   : > { %3144 = vmatpush3.msra.mxu0 %v1402_v51  ;;  %3028 = vmatmul.mubr.f32.gmra.mxu1 %v4140_v53  ;;  %v1527_v51 = vld [vmem:[#allocation2 + $0xb1] sm:$0xff] }
 0x1ab   : > { %3085 = vmatprep.subr.mxu1 %v1271_v54  ;;  %3145 = vmatprep.subr.mxu0 %v1401_v55 }
 0x1ac   : > { %3086 = vmatpush3.msra.mxu1 %v1271_v54  ;;  %3146 = vmatpush3.msra.mxu0 %v1401_v55  ;;  %v1675_v54 = vld [vmem:[#allocation8 + $0x300] sm:$0xff]  ;;  %v1543_v55 = vld [vmem:[#allocation8 + $0x2b8] sm:$0xff] }
 0x1ad   : > { %3087 = vmatprep.subr.mxu1 %v1270_v56  ;;  %3147 = vmatprep.subr.mxu0 %v1400_v58 }
 0x1ae   : > { %3030 = vmatprep.mubr.f32.mxu1 %v4144_v59  ;;  %3088 = vmatpush3.msra.mxu1 %v1270_v56  ;;  %v1967_v56 = vld [vmem:[#allocation8 + $0x478] sm:$0xff] }
 0x1af   : > { %3148 = vmatpush3.msra.mxu0 %v1400_v58  ;;  %3031 = vmatmul.mubr.f32.gmra.mxu1 %v4146_v60  ;;  %v1542_v58 = vld [vmem:[#allocation8 + $0x2b0] sm:$0xff] }
 0x1b0   : > { %3089 = vmatprep.subr.mxu1 %v1269_v62  ;;  %3149 = vmatprep.subr.mxu0 %v1399_v63 }
 0x1b1   : > { %3090 = vmatpush3.msra.mxu1 %v1269_v62  ;;  %3109 = vmatprep.mubr.f32.mxu1 %v1251_v1  ;;  %v1966_v62 = vld [vmem:[#allocation8 + $0x470] sm:$0xff]  ;;  %v1540_v1 = vld [vmem:[#allocation8 + $0x2a0] sm:$0xff] }
 0x1b2   : > { %3150 = vmatpush3.msra.mxu0 %v1399_v63  ;;  %3091 = vmatprep.subr.mxu1 %v1268_v0  ;;  %v1541_v63 = vld [vmem:[#allocation8 + $0x2a8] sm:$0xff] }
 0x1b3   : > { %3151 = vmatprep.subr.mxu0 %v1398_v3  ;;  %3092 = vmatpush3.msra.mxu1 %v1268_v0  ;;  %v1965_v0 = vld [vmem:[#allocation8 + $0x468] sm:$0xff] }
 0x1b4   : > { %3152 = vmatpush3.msra.mxu0 %v1398_v3  ;;  %3093 = vmatprep.subr.mxu1 %v1267_v4  ;;  %v1964_v3 = vld [vmem:[#allocation8 + $0x460] sm:$0xff] }
 0x1b5   : > { %3154 = vmatmul.mubr.f32.vlgmr.msra.gmra.mxu0 %v690_v25  ;;  %3209 = vmatprep.subr.mxu0 %v1690_v5  ;;  %v1263_v25 = vld [vmem:[#allocation8 + $0x198] sm:$0xff] }
 0x1b6   : > { %3094 = vmatpush3.msra.mxu1 %v1267_v4  ;;  %3156 = vmatprep.mubr.f32.mxu0 %v691_v34  ;;  %v1262_v34 = vld [vmem:[#allocation8 + $0x190] sm:$0xff] }
 0x1b7   : > { %3210 = vmatpush3.msra.mxu0 %v1690_v5  ;;  %3095 = vmatprep.subr.mxu1 %v1266_v7  ;;  %v1538_v4 = vld [vmem:[#allocation8 + $0x290] sm:$0xff] }
 0x1b8   : > { %3211 = vmatprep.subr.mxu0 %v1689_v8  ;;  %3096 = vmatpush3.msra.mxu1 %v1266_v7  ;;  %v1962_v5 = vld [vmem:[#allocation8 + $0x450] sm:$0xff]  ;;  %v1673_v7 = vld [vmem:[#allocation2 + $0x260] sm:$0xff] }
 0x1b9   : > { %3212 = vmatpush3.msra.mxu0 %v1689_v8  ;;  %3097 = vmatprep.subr.mxu1 %v1265_v9  ;;  %v1536_v8 = vld [vmem:[#allocation8 + $0x280] sm:$0xff] }
 0x1ba   : > { %3157 = vmatmul.mubr.f32.gmra.mxu0 %v692_v31  ;;  %3213 = vmatprep.subr.mxu0 %v1688_v11  ;;  %v1261_v31 = vld [vmem:[#allocation8 + $0x188] sm:$0xff] }
 0x1bb   : > { %3098 = vmatpush3.msra.mxu1 %v1265_v9  ;;  %3159 = vmatprep.mubr.f32.mxu0 %v693_v40  ;;  %v1396_v40 = vld [vmem:[#allocation2 + $0x81] sm:$0xff] }
 0x1bc   : > { %3214 = vmatpush3.msra.mxu0 %v1688_v11  ;;  %3099 = vmatprep.subr.mxu1 %v1264_v20  ;;  %v1960_v9 = vld [vmem:[#allocation8 + $0x440] sm:$0xff] }
 0x1bd   : > { %3215 = vmatprep.subr.mxu0 %v1687_v23  ;;  %3100 = vmatpush3.msra.mxu1 %v1264_v20  ;;  %v1528_v11 = vld [vmem:[#allocation2 + $0xc1] sm:$0xff]  ;;  %v1828_v20 = vld [vmem:[#allocation8 + $0x3f0] sm:$0xff] }
 0x1be   : > { %3216 = vmatpush3.msra.mxu0 %v1687_v23  ;;  %3101 = vmatprep.subr.mxu1 %v1263_v25  ;;  %v1529_v23 = vld [vmem:[#allocation2 + $0xd1] sm:$0xff] }
 0x1bf   : > { %3160 = vmatmul.mubr.f32.gmra.mxu0 %v694_v37  ;;  %3217 = vmatprep.subr.mxu0 %v1686_v32  ;;  %v1551_v37 = vld [vmem:[#allocation8 + $0x2f8] sm:$0xff] }
 0x1c0   : > { %3102 = vmatpush3.msra.mxu1 %v1263_v25  ;;  %3162 = vmatprep.mubr.f32.mxu0 %v695_v46  ;;  %v1252_v46 = vld [vmem:[#allocation2 + $0xc0] sm:$0xff]  ;;  %v1958_v25 = vld [vmem:[#allocation8 + $0x430] sm:$0xff] }
 0x1c1   : > { %3218 = vmatpush3.msra.mxu0 %v1686_v32  ;;  %3103 = vmatprep.subr.mxu1 %v1262_v34  ;;  %v1827_v32 = vld [vmem:[#allocation8 + $0x3e8] sm:$0xff] }
 0x1c2   : > { %3219 = vmatprep.subr.mxu0 %v1685_v29  ;;  %3104 = vmatpush3.msra.mxu1 %v1262_v34  ;;  %v1957_v34 = vld [vmem:[#allocation8 + $0x428] sm:$0xff] }
 0x1c3   : > { %3220 = vmatpush3.msra.mxu0 %v1685_v29  ;;  %3105 = vmatprep.subr.mxu1 %v1261_v31  ;;  %v1826_v29 = vld [vmem:[#allocation8 + $0x3e0] sm:$0xff] }
 0x1c4   : > { %3163 = vmatmul.mubr.f32.gmra.mxu0 %v1396_v40  ;;  %3221 = vmatprep.subr.mxu0 %v1684_v38  ;;  %v1825_v40 = vld [vmem:[#allocation8 + $0x3d8] sm:$0xff] }
 0x1c5   : > { %3106 = vmatpush3.msra.mxu1 %v1261_v31  ;;  %3222 = vmatpush3.msra.mxu0 %v1684_v38  ;;  %v1531_v31 = vld [vmem:[#allocation2 + $0xf1] sm:$0xff]  ;;  %v1956_v38 = vld [vmem:[#allocation8 + $0x420] sm:$0xff] }
 0x1c6   : > { %3241 = vmatprep.mubr.f32.mxu0 %v4127_v42  ;;  %3107 = vmatprep.subr.mxu1 %v1260_v13  ;;  %v1256_v42 = vld [vmem:[#allocation2 + $0x100] sm:$0xff] }
 0x1c7   : > { %3223 = vmatprep.subr.mxu0 %v1683_v35  ;;  %3108 = vmatpush3.msra.mxu1 %v1260_v13  ;;  %v1955_v13 = vld [vmem:[#allocation8 + $0x418] sm:$0xff] }
 0x1c8   : > { %3224 = vmatpush3.msra.mxu0 %v1683_v35  ;;  %3110 = vmatmul.mubr.f32.vlgmr.msra.gmra.mxu1 %v1252_v46  ;;  %v1532_v35 = vld [vmem:[#allocation2 + $0x101] sm:$0xff]  ;;  %v1954_v46 = vld [vmem:[#allocation8 + $0x410] sm:$0xff] }
 0x1c9   : > { %3165 = vmatprep.subr.mxu1 %v1551_v37  ;;  %3225 = vmatprep.subr.mxu0 %v1682_v44 }
 0x1ca   : > { %3112 = vmatprep.mubr.f32.mxu1 %v1253_v15  ;;  %3166 = vmatpush3.msra.mxu1 %v1551_v37  ;;  %v1824_v37 = vld [vmem:[#allocation8 + $0x3d0] sm:$0xff]  ;;  %v1953_v15 = vld [vmem:[#allocation8 + $0x408] sm:$0xff] }
 0x1cb   : > { %3226 = vmatpush3.msra.mxu0 %v1682_v44  ;;  %3167 = vmatprep.subr.mxu1 %v1550_v14  ;;  %v1533_v44 = vld [vmem:[#allocation2 + $0x111] sm:$0xff] }
 0x1cc   : > { %3227 = vmatprep.subr.mxu0 %v1681_v18  ;;  %3168 = vmatpush3.msra.mxu1 %v1550_v14  ;;  %v1823_v14 = vld [vmem:[#allocation8 + $0x3c8] sm:$0xff] }
 0x1cd   : > { %3228 = vmatpush3.msra.mxu0 %v1681_v18  ;;  %3113 = vmatmul.mubr.f32.gmra.mxu1 %v1254_v27  ;;  %v1534_v18 = vld [vmem:[#allocation2 + $0x121] sm:$0xff] }
 0x1ce   : > { %3169 = vmatprep.subr.mxu1 %v1549_v19  ;;  %3229 = vmatprep.subr.mxu0 %v1680_v24  ;;  %v1952_v27 = vld [vmem:[#allocation8 + $0x400] sm:$0xff] }
 0x1cf   : > { %3115 = vmatprep.mubr.f32.mxu1 %v1255_v36  ;;  %3170 = vmatpush3.msra.mxu1 %v1549_v19  ;;  %v1822_v19 = vld [vmem:[#allocation8 + $0x3c0] sm:$0xff]  ;;  %v1820_v36 = vld [vmem:[#allocation8 + $0x3b0] sm:$0xff] }
 0x1d0   : > { %3230 = vmatpush3.msra.mxu0 %v1680_v24  ;;  %3171 = vmatprep.subr.mxu1 %v1548_v33  ;;  %v1805_v24 = vld [vmem:[#allocation2 + $0x151] sm:$0xff] }
 0x1d1   : > { %3231 = vmatprep.subr.mxu0 %v1679_v21  ;;  %3172 = vmatpush3.msra.mxu1 %v1548_v33  ;;  %v1821_v33 = vld [vmem:[#allocation8 + $0x3b8] sm:$0xff] }
 0x1d2   : > { %3232 = vmatpush3.msra.mxu0 %v1679_v21  ;;  %3116 = vmatmul.mubr.f32.gmra.mxu1 %v1256_v42  ;;  %v1819_v21 = vld [vmem:[#allocation8 + $0x3a8] sm:$0xff]  ;;  %v1816_v42 = vld [vmem:[#allocation8 + $0x390] sm:$0xff] }
 0x1d3   : > { %3173 = vmatprep.subr.mxu1 %v1547_v39  ;;  %3233 = vmatprep.subr.mxu0 %v1678_v41 }
 0x1d4   : > { %3118 = vmatprep.mubr.f32.mxu1 %v1257_v43  ;;  %3174 = vmatpush3.msra.mxu1 %v1547_v39  ;;  %v1818_v39 = vld [vmem:[#allocation8 + $0x3a0] sm:$0xff] }
 0x1d5   : > { %3234 = vmatpush3.msra.mxu0 %v1678_v41  ;;  %3175 = vmatprep.subr.mxu1 %v1546_v10  ;;  %v1817_v41 = vld [vmem:[#allocation8 + $0x398] sm:$0xff]  ;;  %v1810_v43 = vld [vmem:[#allocation2 + $0x1a1] sm:$0xff] }
 0x1d6   : > { %3235 = vmatprep.subr.mxu0 %v1677_v45  ;;  %3176 = vmatpush3.msra.mxu1 %v1546_v10  ;;  %v1808_v10 = vld [vmem:[#allocation2 + $0x181] sm:$0xff] }
 0x1d7   : > { %3236 = vmatpush3.msra.mxu0 %v1677_v45  ;;  %3119 = vmatmul.mubr.f32.gmra.mxu1 %v1258_v28  ;;  %v1812_v45 = vld [vmem:[#allocation2 + $0x1c1] sm:$0xff]  ;;  %v4182_v28 = vld [vmem:[#allocation11 + $0x70] sm:$0xff] }
 0x1d8   : > { %3177 = vmatprep.subr.mxu1 %v1545_v48  ;;  %3237 = vmatprep.subr.mxu0 %v1676_v26  ;;  %4459 = vst [vmem:[#allocation18_spill] sm:$0xff] %v4182_v28 }
 0x1d9   : > { %3178 = vmatpush3.msra.mxu1 %v1545_v48  ;;  %3197 = vmatprep.mubr.f32.mxu1 %v1527_v51  ;;  %v2119_v48 = vld [vmem:[#allocation9 + $0x78] sm:$0xff]  ;;  %v4186_v51 = vld [vmem:[#allocation11 + $0x68] sm:$0xff] }
 0x1da   : > { %3238 = vmatpush3.msra.mxu0 %v1676_v26  ;;  %3179 = vmatprep.subr.mxu1 %v1544_v50  ;;  %v2117_v26 = vld [vmem:[#allocation9 + $0x68] sm:$0xff]  ;;  %4460 = vst [vmem:[#allocation19_spill] sm:$0xff] %v4186_v51 }
 0x1db   : > { %3239 = vmatprep.subr.mxu0 %v1675_v54  ;;  %3180 = vmatpush3.msra.mxu1 %v1544_v50  ;;  %v2116_v50 = vld [vmem:[#allocation9 + $0x60] sm:$0xff] }
 0x1dc   : > { %3240 = vmatpush3.msra.mxu0 %v1675_v54  ;;  %3181 = vmatprep.subr.mxu1 %v1543_v55  ;;  %v2115_v54 = vld [vmem:[#allocation9 + $0x58] sm:$0xff] }
 0x1dd   : > { %3242 = vmatmul.mubr.f32.vlgmr.msra.gmra.mxu0 %v4132_v47  ;;  %3297 = vmatprep.subr.mxu0 %v1967_v56  ;;  %v1539_v47 = vld [vmem:[#allocation8 + $0x298] sm:$0xff] }
 0x1de   : > { %3182 = vmatpush3.msra.mxu1 %v1543_v55  ;;  %3244 = vmatprep.mubr.f32.mxu0 %v4135_v49  ;;  %v1963_v49 = vld [vmem:[#allocation8 + $0x458] sm:$0xff]  ;;  %v4190_v55 = vld [vmem:[#allocation11 + $0x60] sm:$0xff] }
 0x1df   : > { %3298 = vmatpush3.msra.mxu0 %v1967_v56  ;;  %3183 = vmatprep.subr.mxu1 %v1542_v58  ;;  %4461 = vst [vmem:[#allocation20_spill] sm:$0xff] %v4190_v55  ;;  %v2114_v56 = vld [vmem:[#allocation9 + $0x50] sm:$0xff] }
 0x1e0   : > { %3299 = vmatprep.subr.mxu0 %v1966_v62  ;;  %3184 = vmatpush3.msra.mxu1 %v1542_v58  ;;  %v4194_v58 = vld [vmem:[#allocation11 + $0x58] sm:$0xff] }
 0x1e1   : > { %3300 = vmatpush3.msra.mxu0 %v1966_v62  ;;  %3185 = vmatprep.subr.mxu1 %v1541_v63  ;;  %4462 = vst [vmem:[#allocation21_spill] sm:$0xff] %v4194_v58  ;;  %v2113_v62 = vld [vmem:[#allocation9 + $0x48] sm:$0xff] }
 0x1e2   : > { %3245 = vmatmul.mubr.f32.gmra.mxu0 %v4138_v52  ;;  %3301 = vmatprep.subr.mxu0 %v1965_v0  ;;  %v1537_v52 = vld [vmem:[#allocation8 + $0x288] sm:$0xff] }
 0x1e3   : > { %3186 = vmatpush3.msra.mxu1 %v1541_v63  ;;  %3247 = vmatprep.mubr.f32.mxu0 %v4140_v53  ;;  %v1961_v53 = vld [vmem:[#allocation8 + $0x448] sm:$0xff]  ;;  %v4198_v63 = vld [vmem:[#allocation11 + $0x50] sm:$0xff] }
 0x1e4   : > { %3302 = vmatpush3.msra.mxu0 %v1965_v0  ;;  %3187 = vmatprep.subr.mxu1 %v1540_v1  ;;  %4463 = vst [vmem:[#allocation22_spill] sm:$0xff] %v4198_v63  ;;  %v2112_v0 = vld [vmem:[#allocation9 + $0x40] sm:$0xff] }
 0x1e5   : > { %3303 = vmatprep.subr.mxu0 %v1964_v3  ;;  %3188 = vmatpush3.msra.mxu1 %v1540_v1  ;;  %v4202_v1 = vld [vmem:[#allocation11 + $0x48] sm:$0xff] }
 0x1e6   : > { %3304 = vmatpush3.msra.mxu0 %v1964_v3  ;;  %3189 = vmatprep.subr.mxu1 %v1539_v47  ;;  %4464 = vst [vmem:[#allocation23_spill] sm:$0xff] %v4202_v1  ;;  %v2111_v3 = vld [vmem:[#allocation9 + $0x38] sm:$0xff] }
 0x1e7   : > { %3248 = vmatmul.mubr.f32.gmra.mxu0 %v4144_v59  ;;  %3305 = vmatprep.subr.mxu0 %v1963_v49  ;;  %v1829_v59 = vld [vmem:[#allocation8 + $0x3f8] sm:$0xff] }
 0x1e8   : > { %3190 = vmatpush3.msra.mxu1 %v1539_v47  ;;  %3250 = vmatprep.mubr.f32.mxu0 %v4146_v60  ;;  %v1959_v60 = vld [vmem:[#allocation8 + $0x438] sm:$0xff]  ;;  %v4206_v47 = vld [vmem:[#allocation11 + $0x40] sm:$0xff] }
 0x1e9   : > { %3306 = vmatpush3.msra.mxu0 %v1963_v49  ;;  %3191 = vmatprep.subr.mxu1 %v1538_v4  ;;  %4465 = vst [vmem:[#allocation24_spill] sm:$0xff] %v4206_v47  ;;  %v2110_v49 = vld [vmem:[#allocation9 + $0x30] sm:$0xff] }
 0x1ea   : > { %3307 = vmatprep.subr.mxu0 %v1962_v5  ;;  %3192 = vmatpush3.msra.mxu1 %v1538_v4  ;;  %v4210_v4 = vld [vmem:[#allocation11 + $0x38] sm:$0xff] }
 0x1eb   : > { %3308 = vmatpush3.msra.mxu0 %v1962_v5  ;;  %3193 = vmatprep.subr.mxu1 %v1537_v52  ;;  %4466 = vst [vmem:[#allocation25_spill] sm:$0xff] %v4210_v4  ;;  %v2109_v5 = vld [vmem:[#allocation9 + $0x28] sm:$0xff] }
 0x1ec   : > { %3251 = vmatmul.mubr.f32.gmra.mxu0 %v1673_v7  ;;  %3309 = vmatprep.subr.mxu0 %v1961_v53  ;;  %v4218_v7 = vld [vmem:[#allocation11 + $0x28] sm:$0xff] }
 0x1ed   : > { %3194 = vmatpush3.msra.mxu1 %v1537_v52  ;;  %3310 = vmatpush3.msra.mxu0 %v1961_v53  ;;  %v4214_v52 = vld [vmem:[#allocation11 + $0x30] sm:$0xff]  ;;  %v2108_v53 = vld [vmem:[#allocation9 + $0x20] sm:$0xff]  ;;  %4468 = vst [vmem:[#allocation27_spill] sm:$0xff] %v4218_v7 }
 0x1ee   : > { %3329 = vmatprep.mubr.f32.mxu0 %v4090_v61  ;;  %3195 = vmatprep.subr.mxu1 %v1536_v8  ;;  %v1530_v61 = vld [vmem:[#allocation2 + $0xe1] sm:$0xff]  ;;  %4467 = vst [vmem:[#allocation26_spill] sm:$0xff] %v4214_v52 }
 0x1ef   : > { %3311 = vmatprep.subr.mxu0 %v1960_v9  ;;  %3196 = vmatpush3.msra.mxu1 %v1536_v8  ;;  %v2107_v8 = vld [vmem:[#allocation9 + $0x18] sm:$0xff] }
 0x1f0   : > { %3312 = vmatpush3.msra.mxu0 %v1960_v9  ;;  %3198 = vmatmul.mubr.f32.vlgmr.msra.gmra.mxu1 %v1528_v11  ;;  %v4222_v9 = vld [vmem:[#allocation11 + $0x20] sm:$0xff]  ;;  %v2105_v11 = vld [vmem:[#allocation9 + $0x8] sm:$0xff] }
 0x1f1   : > { %3253 = vmatprep.subr.mxu1 %v1829_v59  ;;  %3313 = vmatprep.subr.mxu0 %v1959_v60  ;;  %4469 = vst [vmem:[#allocation28_spill] sm:$0xff] %v4222_v9 }
 0x1f2   : > { %3200 = vmatprep.mubr.f32.mxu1 %v1529_v23  ;;  %3254 = vmatpush3.msra.mxu1 %v1829_v59  ;;  %v2106_v59 = vld [vmem:[#allocation9 + $0x10] sm:$0xff]  ;;  %v2104_v23 = vld [vmem:[#allocation9] sm:$0xff] }
 0x1f3   : > { %3314 = vmatpush3.msra.mxu0 %v1959_v60  ;;  %3255 = vmatprep.subr.mxu1 %v1828_v20  ;;  %v4226_v60 = vld [vmem:[#allocation11 + $0x18] sm:$0xff] }
 0x1f4   : > { %3315 = vmatprep.subr.mxu0 %v1958_v25  ;;  %3256 = vmatpush3.msra.mxu1 %v1828_v20  ;;  %4470 = vst [vmem:[#allocation29_spill] sm:$0xff] %v4226_v60  ;;  %v4230_v20 = vld [vmem:[#allocation11 + $0x10] sm:$0xff] }
 0x1f5   : > { %3316 = vmatpush3.msra.mxu0 %v1958_v25  ;;  %3201 = vmatmul.mubr.f32.gmra.mxu1 %v1530_v61  ;;  %4471 = vst [vmem:[#allocation30_spill] sm:$0xff] %v4230_v20  ;;  %v2232_v61 = vld [vmem:[%s3982_s24] sm:$0xff] }
 0x1f6   : > { %3257 = vmatprep.subr.mxu1 %v1827_v32  ;;  %3317 = vmatprep.subr.mxu0 %v1957_v34 }
 0x1f7   : > { %3203 = vmatprep.mubr.f32.mxu1 %v1531_v31  ;;  %3258 = vmatpush3.msra.mxu1 %v1827_v32  ;;  %v4236_v32 = vld [vmem:[#allocation11 + $0x8] sm:$0xff] }
 0x1f8   : > { %3318 = vmatpush3.msra.mxu0 %v1957_v34  ;;  %3259 = vmatprep.subr.mxu1 %v1826_v29  ;;  %4472 = vst [vmem:[#allocation31_spill] sm:$0xff] %v4236_v32  ;;  %v4241_v34 = vld [vmem:[#allocation11] sm:$0xff]  ;;  %v2233_v31 = vld [vmem:[%s3982_s24 + $0x8] sm:$0xff] }
 0x1f9   : > { %3319 = vmatprep.subr.mxu0 %v1956_v38  ;;  %3260 = vmatpush3.msra.mxu1 %v1826_v29  ;;  %4473 = vst [vmem:[#allocation32_spill] sm:$0xff] %v4241_v34 }
 0x1fa   : > { %3320 = vmatpush3.msra.mxu0 %v1956_v38  ;;  %3204 = vmatmul.mubr.f32.gmra.mxu1 %v1532_v35 }
 0x1fb   : > { %3261 = vmatprep.subr.mxu1 %v1825_v40  ;;  %3321 = vmatprep.subr.mxu0 %v1955_v13 }
 0x1fc   : > { %3206 = vmatprep.mubr.f32.mxu1 %v1533_v44  ;;  %3262 = vmatpush3.msra.mxu1 %v1825_v40  ;;  %v2234_v40 = vld [vmem:[%s3982_s24 + $0x10] sm:$0xff] }
 0x1fd   : > { %3322 = vmatpush3.msra.mxu0 %v1955_v13  ;;  %3263 = vmatprep.subr.mxu1 %v1824_v37  ;;  %v2235_v13 = vld [vmem:[%s3982_s24 + $0x18] sm:$0xff] }
 0x1fe   : > { %3323 = vmatprep.subr.mxu0 %v1954_v46  ;;  %3264 = vmatpush3.msra.mxu1 %v1824_v37 }
 0x1ff   : > { %3324 = vmatpush3.msra.mxu0 %v1954_v46  ;;  %3207 = vmatmul.mubr.f32.gmra.mxu1 %v1534_v18 }
 0x200   : > { %3265 = vmatprep.subr.mxu1 %v1823_v14  ;;  %3325 = vmatprep.subr.mxu0 %v1953_v15 }
 0x201   : > { %3266 = vmatpush3.msra.mxu1 %v1823_v14  ;;  %3285 = vmatprep.mubr.f32.mxu1 %v1805_v24 }
 0x202   : > { %3326 = vmatpush3.msra.mxu0 %v1953_v15  ;;  %3267 = vmatprep.subr.mxu1 %v1822_v19 }
 0x203   : > { %3327 = vmatprep.subr.mxu0 %v1952_v27  ;;  %3268 = vmatpush3.msra.mxu1 %v1822_v19 }
 0x204   : > { %3328 = vmatpush3.msra.mxu0 %v1952_v27  ;;  %3269 = vmatprep.subr.mxu1 %v1821_v33 }
 0x205   : > { %3330 = vmatmul.mubr.f32.vlgmr.msra.gmra.mxu0 %v4086_v57  ;;  %3270 = vmatpush3.msra.mxu1 %v1821_v33  ;;  %v1815_v57 = vld [vmem:[#allocation8 + $0x388] sm:$0xff] }
 0x206   : > { %3332 = vmatprep.mubr.f32.mxu0 %v4100_v6  ;;  %3271 = vmatprep.subr.mxu1 %v1820_v36  ;;  %v1814_v6 = vld [vmem:[#allocation8 + $0x380] sm:$0xff] }
 0x207   : > { %3272 = vmatpush3.msra.mxu1 %v1820_v36 }
 0x208   : > { %3273 = vmatprep.subr.mxu1 %v1819_v21 }
 0x209   : > { %3333 = vmatmul.mubr.f32.gmra.mxu0 %v4094_v2  ;;  %3274 = vmatpush3.msra.mxu1 %v1819_v21  ;;  %v1806_v2 = vld [vmem:[#allocation2 + $0x161] sm:$0xff] }
 0x20a   : > { %3335 = vmatprep.mubr.f32.mxu0 %v4109_v16  ;;  %3275 = vmatprep.subr.mxu1 %v1818_v39  ;;  %v1807_v16 = vld [vmem:[#allocation2 + $0x171] sm:$0xff] }
 0x20b   : > { %3276 = vmatpush3.msra.mxu1 %v1818_v39 }
 0x20c   : > { %3277 = vmatprep.subr.mxu1 %v1817_v41 }
 0x20d   : > { %3336 = vmatmul.mubr.f32.gmra.mxu0 %v4104_v12  ;;  %3278 = vmatpush3.msra.mxu1 %v1817_v41  ;;  %v1809_v12 = vld [vmem:[#allocation2 + $0x191] sm:$0xff] }
 0x20e   : > { %3338 = vmatprep.mubr.f32.mxu0 %v4121_v30  ;;  %3279 = vmatprep.subr.mxu1 %v1816_v42  ;;  %v1811_v30 = vld [vmem:[#allocation2 + $0x1b1] sm:$0xff] }
 0x20f   : > { %3280 = vmatpush3.msra.mxu1 %v1816_v42 }
 0x210   : > { %3281 = vmatprep.subr.mxu1 %v1815_v57 }
 0x211   : > { %3339 = vmatmul.mubr.f32.gmra.mxu0 %v720_v22  ;;  %3282 = vmatpush3.msra.mxu1 %v1815_v57  ;;  %v4178_v22 = vld [vmem:[#allocation11 + $0x78] sm:$0xff] }
 0x212   : > { %3283 = vmatprep.subr.mxu1 %v1814_v6  ;;  %4458 = vst [vmem:[#allocation17_spill] sm:$0xff] %v4178_v22  ;;  %3385 = vmatprep.subr.mxu0 %v4178_v22 }
 0x213   : > { %3284 = vmatpush3.msra.mxu1 %v1814_v6  ;;  %3386 = vmatpush3.msra.mxu0 %v4178_v22 }
 0x214   : > { %3286 = vmatmul.mubr.f32.vlgmr.msra.gmra.mxu1 %v1806_v2  ;;  %3341 = vmatprep.subr.mxu1 %v2119_v48 }
 0x215   : > { %3288 = vmatprep.mubr.f32.mxu1 %v1807_v16  ;;  %3342 = vmatpush3.msra.mxu1 %v2119_v48 }
 0x216   : > { %3343 = vmatprep.subr.mxu1 %v2118_v17  ;;  %3387 = vmatprep.subr.mxu0 %v4182_v28 }
 0x217   : > { %3344 = vmatpush3.msra.mxu1 %v2118_v17  ;;  %3388 = vmatpush3.msra.mxu0 %v4182_v28 }
 0x218   : > { %3289 = vmatmul.mubr.f32.gmra.mxu1 %v1808_v10  ;;  %3345 = vmatprep.subr.mxu1 %v2117_v26 }
 0x219   : > { %3291 = vmatprep.mubr.f32.mxu1 %v1809_v12  ;;  %3346 = vmatpush3.msra.mxu1 %v2117_v26 }
 0x21a   : > { %3347 = vmatprep.subr.mxu1 %v2116_v50  ;;  %3389 = vmatprep.subr.mxu0 %v4186_v51 }
 0x21b   : > { %3348 = vmatpush3.msra.mxu1 %v2116_v50  ;;  %3390 = vmatpush3.msra.mxu0 %v4186_v51 }
 0x21c   : > { %3292 = vmatmul.mubr.f32.gmra.mxu1 %v1810_v43  ;;  %3349 = vmatprep.subr.mxu1 %v2115_v54 }
 0x21d   : > { %3294 = vmatprep.mubr.f32.mxu1 %v1811_v30  ;;  %3350 = vmatpush3.msra.mxu1 %v2115_v54 }
 0x21e   : > { %3391 = vmatprep.subr.mxu0 %v4190_v55  ;;  %3351 = vmatprep.subr.mxu1 %v2114_v56 }
 0x21f   : > { %3392 = vmatpush3.msra.mxu0 %v4190_v55  ;;  %3352 = vmatpush3.msra.mxu1 %v2114_v56 }
 0x220   : > { %3295 = vmatmul.mubr.f32.gmra.mxu1 %v1812_v45  ;;  %3393 = vmatprep.subr.mxu0 %v4194_v58 }
 0x221   : > { %3353 = vmatprep.subr.mxu1 %v2113_v62  ;;  %3394 = vmatpush3.msra.mxu0 %v4194_v58 }
 0x222   : > { %3354 = vmatpush3.msra.mxu1 %v2113_v62  ;;  %3395 = vmatprep.subr.mxu0 %v4198_v63 }
 0x223   : > { %3355 = vmatprep.subr.mxu1 %v2112_v0  ;;  %3396 = vmatpush3.msra.mxu0 %v4198_v63 }
 0x224   : > { %3356 = vmatpush3.msra.mxu1 %v2112_v0  ;;  %3397 = vmatprep.subr.mxu0 %v4202_v1 }
 0x225   : > { %3357 = vmatprep.subr.mxu1 %v2111_v3  ;;  %3398 = vmatpush3.msra.mxu0 %v4202_v1 }
 0x226   : > { %3358 = vmatpush3.msra.mxu1 %v2111_v3  ;;  %3399 = vmatprep.subr.mxu0 %v4206_v47 }
 0x227   : > { %3359 = vmatprep.subr.mxu1 %v2110_v49  ;;  %3400 = vmatpush3.msra.mxu0 %v4206_v47 }
 0x228   : > { %3360 = vmatpush3.msra.mxu1 %v2110_v49  ;;  %3401 = vmatprep.subr.mxu0 %v4210_v4 }
 0x229   : > { %3361 = vmatprep.subr.mxu1 %v2109_v5  ;;  %3402 = vmatpush3.msra.mxu0 %v4210_v4 }
 0x22a   : > { %3362 = vmatpush3.msra.mxu1 %v2109_v5  ;;  %3403 = vmatprep.subr.mxu0 %v4214_v52 }
 0x22b   : > { %3363 = vmatprep.subr.mxu1 %v2108_v53  ;;  %3404 = vmatpush3.msra.mxu0 %v4214_v52 }
 0x22c   : > { %3364 = vmatpush3.msra.mxu1 %v2108_v53  ;;  %3405 = vmatprep.subr.mxu0 %v4218_v7 }
 0x22d   : > { %3365 = vmatprep.subr.mxu1 %v2107_v8  ;;  %3406 = vmatpush3.msra.mxu0 %v4218_v7 }
 0x22e   : > { %3366 = vmatpush3.msra.mxu1 %v2107_v8  ;;  %3407 = vmatprep.subr.mxu0 %v4222_v9 }
 0x22f   : > { %3367 = vmatprep.subr.mxu1 %v2106_v59  ;;  %3408 = vmatpush3.msra.mxu0 %v4222_v9 }
 0x230   : > { %3368 = vmatpush3.msra.mxu1 %v2106_v59  ;;  %3409 = vmatprep.subr.mxu0 %v4226_v60 }
 0x231   : > { %3369 = vmatprep.subr.mxu1 %v2105_v11  ;;  %3410 = vmatpush3.msra.mxu0 %v4226_v60 }
 0x232   : > { %3370 = vmatpush3.msra.mxu1 %v2105_v11  ;;  %3411 = vmatprep.subr.mxu0 %v4230_v20 }
 0x233   : > { %3371 = vmatprep.subr.mxu1 %v2104_v23  ;;  %3412 = vmatpush3.msra.mxu0 %v4230_v20 }
 0x234   : > { %3372 = vmatpush3.msra.mxu1 %v2104_v23  ;;  %3413 = vmatprep.subr.mxu0 %v4236_v32 }
 0x235   : > { %3429 = vmatprep.subr.mxu1 %v4178_v22  ;;  %3414 = vmatpush3.msra.mxu0 %v4236_v32 }
 0x236   : > { %3415 = vmatprep.subr.mxu0 %v4241_v34  ;;  %3417 = vmatprep.mubr.f32.mxu0 %v2232_v61 }
 0x237   : > { %3416 = vmatpush3.msra.mxu0 %v4241_v34 }
 0x238   : > { %3418 = vmatmul.mubr.f32.vlgmr.msra.gmra.mxu0 %v2233_v31 }
 0x239   : > { %3420 = vmatprep.mubr.f32.mxu0 %v2234_v40 }
 0x23c   : > { %3421 = vmatmul.mubr.f32.gmra.mxu0 %v2235_v13 }
 0x23d   : > { %v4233_v25 = vpop.f32.mrf.mxu1 }
 0x23f   : > { %v968_v29 = vpop.f32.mrf.mxu1 }
 0x241   : > { %v2982_v38 = vpop.f32.mrf.mxu1 }
 0x243   : > { %v978_v35 = vpop.f32.mrf.mxu1 }
 0x245   : > { %v2985_v37 = vpop.f32.mrf.mxu1 }
 0x247   : > { %v988_v46 = vpop.f32.mrf.mxu1 }
 0x249   : > { %v4249_v15 = vpop.f32.mrf.mxu1 }
 0x24b   : > { %v4251_v19 = vpop.f32.mrf.mxu1 }
 0x24d   : > { %v3067_v44 = vpop.f32.mrf.mxu0 }
 0x24f   : > { %v1203_v14 = vpop.f32.mrf.mxu0 }
 0x253   : > { %v3070_v18 = vpop.f32.mrf.mxu0 }
 0x255   : > { %v1213_v24 = vpop.f32.mrf.mxu0 }
 0x258   : > { %v3073_v33 = vpop.f32.mrf.mxu0 }
 0x25a   : > { %v1223_v21 = vpop.f32.mrf.mxu0 }
 0x25d   : > { %v4253_v41 = vpop.f32.mrf.mxu0 }
 0x25f   : > { %v4255_v57 = vpop.f32.mrf.mxu0 }
 0x260   : > { %v3023_v27 = vpop.f32.mrf.mxu1 }
 0x261   : > { %v1079_v60 = vadd.f32 %v3023_v27, %v4233_v25 }
 0x262   : > { %v1073_v36 = vpop.f32.mrf.mxu1 }
 0x263   : > { %v1074_v9 = vadd.f32 %v1073_v36, %v968_v29  ;;  %v1243_v47 = vadd.f32 %v3067_v44, %v1079_v60 }
 0x265   : > { %v3026_v39 = vpop.f32.mrf.mxu1  ;;  %v1242_v55 = vadd.f32 %v1203_v14, %v1074_v9 }
 0x266   : > { %v1089_v4 = vadd.f32 %v3026_v39, %v2982_v38 }
 0x267   : > { %v1083_v42 = vpop.f32.mrf.mxu1 }
 0x268   : > { %v1084_v63 = vadd.f32 %v1083_v42, %v978_v35  ;;  %v1245_v22 = vadd.f32 %v3070_v18, %v1089_v4 }
 0x26a   : > { %v3029_v6 = vpop.f32.mrf.mxu1 }
 0x26b   : > { %v1099_v51 = vadd.f32 %v3029_v6, %v2985_v37 }
 0x26c   : > { %v1093_v16 = vpop.f32.mrf.mxu1 }
 0x26d   : > { %v1247_v25 = vadd.f32 %v3073_v33, %v1099_v51 }
 0x26f   : > { %v3032_v12 = vpop.f32.mrf.mxu1 }
 0x270   : > { %v1109_v27 = vadd.f32 %v3032_v12, %v4249_v15 }
 0x271   : > { %v1103_v30 = vpop.f32.mrf.mxu1 }
 0x275   : > { %v3155_v2 = vpop.f32.mrf.mxu0 }
 0x277   : > { %v1480_v10 = vpop.f32.mrf.mxu0 }
 0x27a   : > { %v3158_v43 = vpop.f32.mrf.mxu0 }
 0x27c   : > { %v1490_v45 = vpop.f32.mrf.mxu0 }
 0x27f   : > { %v3161_v17 = vpop.f32.mrf.mxu0 }
 0x281   : > { %v4257_v50 = vpop.f32.mrf.mxu0 }
 0x284   : > { %v4259_v56 = vpop.f32.mrf.mxu0 }
 0x285   : > { %4474 = vst [vmem:[#allocation33_spill] sm:$0xff] %v4259_v56 }
 0x286   : > { %v4261_v0 = vpop.f32.mrf.mxu0 }
 0x287   : > { %4475 = vst [vmem:[#allocation34_spill] sm:$0xff] %v4261_v0 }
 0x288   : > { %v3111_v48 = vpop.f32.mrf.mxu1 }
 0x289   : > { %v1382_v58 = vadd.f32 %v3111_v48, %v1243_v47  ;;  %v1104_v47 = vadd.f32 %v1103_v30, %v4251_v19 }
 0x28a   : > { %v1342_v26 = vpop.f32.mrf.mxu1 }
 0x28b   : > { %v1520_v56 = vadd.f32 %v3155_v2, %v1382_v58  ;;  %v1248_v14 = vadd.f32 %v4255_v57, %v1104_v47 }
 0x28c   : > { %v4480_v30 = vld [vmem:[#allocation33_spill] sm:$0xff] }
 0x28d   : > { %v3114_v54 = vpop.f32.mrf.mxu1 }
 0x28f   : > { %v1352_v62 = vpop.f32.mrf.mxu1 }
 0x292   : > { %v3117_v3 = vpop.f32.mrf.mxu1 }
 0x293   : > { %v1386_v9 = vadd.f32 %v3117_v3, %v1247_v25 }
 0x294   : > { %v1362_v5 = vpop.f32.mrf.mxu1 }
 0x295   : > { %v1524_v15 = vadd.f32 %v3161_v17, %v1386_v9 }
 0x297   : > { %v3120_v8 = vpop.f32.mrf.mxu1 }
 0x299   : > { %v1372_v11 = vpop.f32.mrf.mxu1 }
 0x29a   : > { %v1387_v39 = vadd.f32 %v1372_v11, %v1248_v14 }
 0x29d   : > { %v3243_v49 = vpop.f32.mrf.mxu0 }
 0x29f   : > { %v1757_v53 = vpop.f32.mrf.mxu0 }
 0x2a2   : > { %v3246_v59 = vpop.f32.mrf.mxu0 }
 0x2a4   : > { %v4263_v23 = vpop.f32.mrf.mxu0 }
 0x2a5   : > { %4476 = vst [vmem:[#allocation35_spill] sm:$0xff] %v4263_v23  ;;  %v1384_v23 = vadd.f32 %v3114_v54, %v1245_v22 }
 0x2a7   : > { %v4265_v31 = vpop.f32.mrf.mxu0  ;;  %v1522_v4 = vadd.f32 %v3158_v43, %v1384_v23 }
 0x2a8   : > { %4477 = vst [vmem:[#allocation36_spill] sm:$0xff] %v4265_v31  ;;  %v1094_v31 = vadd.f32 %v1093_v16, %v988_v46 }
 0x2a9   : > { %v4267_v13 = vpop.f32.mrf.mxu0 }
 0x2aa   : > { %4478 = vst [vmem:[#allocation37_spill] sm:$0xff] %v4267_v13  ;;  %v1381_v13 = vadd.f32 %v1342_v26, %v1242_v55  ;;  %v1246_v44 = vadd.f32 %v1223_v21, %v1094_v31 }
 0x2ac   : > { %v4269_v32 = vpop.f32.mrf.mxu0  ;;  %v1519_v60 = vadd.f32 %v1480_v10, %v1381_v13  ;;  %v1385_v55 = vadd.f32 %v1362_v5, %v1246_v44  ;;  %v4481_v17 = vld [vmem:[#allocation35_spill] sm:$0xff] }
 0x2ad   : > { %4479 = vst [vmem:[#allocation38_spill] sm:$0xff] %v4269_v32  ;;  %v1244_v32 = vadd.f32 %v1213_v24, %v1084_v63  ;;  %v1249_v63 = vadd.f32 %v4253_v41, %v1109_v27 }
 0x2ae   : > { %v4272_v7 = vpop.f32.mrf.mxu0  ;;  %v1523_v6 = vadd.f32 %v4257_v50, %v1385_v55 }
 0x2af   : > { %v1383_v36 = vadd.f32 %v1352_v62, %v1244_v32  ;;  %v1388_v24 = vadd.f32 %v3120_v8, %v1249_v63 }
 0x2b0   : > { %v3199_v61 = vpop.f32.mrf.mxu1 }
 0x2b1   : > { %v1658_v38 = vadd.f32 %v3199_v61, %v1520_v56  ;;  %v1521_v58 = vadd.f32 %v1490_v45, %v1383_v36  ;;  %v1526_v45 = vadd.f32 %v4480_v30, %v1388_v24  ;;  %v4497_v30 = vld [vmem:[#allocation28_spill] sm:$0xff] }
 0x2b2   : > { %v1618_v40 = vpop.f32.mrf.mxu1 }
 0x2b3   : > { %v1657_v37 = vadd.f32 %v1618_v40, %v1519_v60  ;;  %v1797_v51 = vadd.f32 %v3243_v49, %v1658_v38 }
 0x2b4   : > { %v4485_v38 = vld [vmem:[#allocation38_spill] sm:$0xff] }
 0x2b5   : > { %v3202_v34 = vpop.f32.mrf.mxu1  ;;  %v1796_v19 = vadd.f32 %v1757_v53, %v1657_v37  ;;  %v4486_v37 = vld [vmem:[#allocation17_spill] sm:$0xff] }
 0x2b6   : > { %v1660_v22 = vadd.f32 %v3202_v34, %v1522_v4  ;;  %v2543_v34 = vld [vmem:[%s4395_s4] ss:$0 sm:$0xff] }
 0x2b7   : > { %v1628_v20 = vpop.f32.mrf.mxu1 }
 0x2b8   : > { %v1659_v33 = vadd.f32 %v1628_v20, %v1521_v58  ;;  %v1799_v10 = vadd.f32 %v3246_v59, %v1660_v22  ;;  %v4484_v59 = vld [vmem:[#allocation37_spill] sm:$0xff] }
 0x2ba   : > { %v3205_v52 = vpop.f32.mrf.mxu1  ;;  %v1798_v26 = vadd.f32 %v4481_v17, %v1659_v33  ;;  %v4489_v33 = vld [vmem:[#allocation20_spill] sm:$0xff]  ;;  %v2237_v17 = vld [vmem:[%s3982_s24 + $0x28] sm:$0xff] }
 0x2bb   : > { %v1662_v42 = vadd.f32 %v3205_v52, %v1524_v15  ;;  %v4482_v52 = vld [vmem:[#allocation34_spill] sm:$0xff] }
 0x2bc   : > { %v1638_v28 = vpop.f32.mrf.mxu1  ;;  %v1525_v54 = vadd.f32 %v4482_v52, %v1387_v39  ;;  %v2238_v52 = vld [vmem:[%s3982_s24 + $0x30] sm:$0xff] }
 0x2bd   : > { %v1661_v57 = vadd.f32 %v1638_v28, %v1523_v6 }
 0x2bf   : > { %v3208_v29 = vpop.f32.mrf.mxu1  ;;  %v1800_v11 = vadd.f32 %v4484_v59, %v1661_v57  ;;  %v4494_v57 = vld [vmem:[#allocation25_spill] sm:$0xff] }
 0x2c0   : > { %v1664_v3 = vadd.f32 %v3208_v29, %v1526_v45  ;;  %v4498_v45 = vld [vmem:[#allocation29_spill] sm:$0xff] }
 0x2c1   : > { %v1648_v46 = vpop.f32.mrf.mxu1 }
 0x2c2   : > { %v1663_v23 = vadd.f32 %v1648_v46, %v1525_v54  ;;  %v1803_v60 = vadd.f32 %v4485_v38, %v1664_v3  ;;  %v4487_v46 = vld [vmem:[#allocation18_spill] sm:$0xff]  ;;  %v2239_v54 = vld [vmem:[%s3982_s24 + $0x38] sm:$0xff] }
 0x2c4   : > { %v1802_v4 = vadd.f32 %v4272_v7, %v1663_v23 }
 0x2c5   : > { %v3331_v1 = vpop.f32.mrf.mxu0 }
 0x2c7   : > { %v2034_v0 = vpop.f32.mrf.mxu0 }
 0x2c9   : > { %v3334_v35 = vpop.f32.mrf.mxu0 }
 0x2cb   : > { %v2044_v32 = vpop.f32.mrf.mxu0 }
 0x2cd   : > { %v3337_v12 = vpop.f32.mrf.mxu0 }
 0x2cf   : > { %v2054_v8 = vpop.f32.mrf.mxu0 }
 0x2d1   : > { %v3340_v44 = vpop.f32.mrf.mxu0 }
 0x2d4   : > { %v3287_v18 = vpop.f32.mrf.mxu1 }
 0x2d5   : > { %v1936_v21 = vadd.f32 %v3287_v18, %v1797_v51  ;;  %v4488_v18 = vld [vmem:[#allocation19_spill] sm:$0xff] }
 0x2d6   : > { %v1896_v2 = vpop.f32.mrf.mxu1 }
 0x2d7   : > { %v2074_v16 = vadd.f32 %v3331_v1, %v1936_v21  ;;  %v1935_v41 = vadd.f32 %v1896_v2, %v1796_v19  ;;  %v4483_v1 = vld [vmem:[#allocation36_spill] sm:$0xff]  ;;  %v4491_v2 = vld [vmem:[#allocation22_spill] sm:$0xff] }
 0x2d8   : > { %v3290_v43 = vpop.f32.mrf.mxu1  ;;  %v1801_v62 = vadd.f32 %v4483_v1, %v1662_v42  ;;  %v4490_v42 = vld [vmem:[#allocation21_spill] sm:$0xff] }
 0x2d9   : > { %v2073_v20 = vadd.f32 %v2034_v0, %v1935_v41  ;;  %v1938_v48 = vadd.f32 %v3290_v43, %v1799_v10  ;;  %v2089_v50 = vadd.f32 %v2543_v34, %v2074_v16  ;;  %v2236_v41 = vld [vmem:[%s3982_s24 + $0x20] sm:$0xff]  ;;  %v4492_v10 = vld [vmem:[#allocation23_spill] sm:$0xff] }
 0x2da   : > { %v1906_v56 = vpop.f32.mrf.mxu1  ;;  %v4496_v43 = vld [vmem:[#allocation27_spill] sm:$0xff] }
 0x2db   : > { %v2076_v49 = vadd.f32 %v3334_v35, %v1938_v48  ;;  %v1937_v5 = vadd.f32 %v1906_v56, %v1798_v26  ;;  %v2088_v53 = vadd.f32 %v2543_v34, %v2073_v20  ;;  %v2097_v40 = vmax.f32 %v2089_v50, 0.0  ;;  %v4499_v20 = vld [vmem:[#allocation30_spill] sm:$0xff]  ;;  %v4500_v48 = vld [vmem:[#allocation31_spill] sm:$0xff]  ;;  %v4501_v26 = vld [vmem:[#allocation32_spill] sm:$0xff] }
 0x2dc   : > { %v3293_v28 = vpop.f32.mrf.mxu1  ;;  %v2544_v56 = vld [vmem:[%s4397_s6] ss:$0 sm:$0xff] }
 0x2dd   : > { %v2075_v61 = vadd.f32 %v2044_v32, %v1937_v5  ;;  %v1940_v0 = vadd.f32 %v3293_v28, %v1801_v62  ;;  %v2096_v31 = vmax.f32 %v2088_v53, 0.0  ;;  %v2091_v25 = vadd.f32 %v2543_v34, %v2076_v49  ;;  %v2064_v32 = vpop.f32.mrf.mxu0  ;;  %v2545_v5 = vld [vmem:[%s4399_s8] ss:$0 sm:$0xff] }
 0x2de   : > { %v1916_v13 = vpop.f32.mrf.mxu1 }
 0x2df   : > { %v2078_v27 = vadd.f32 %v3337_v12, %v1940_v0  ;;  %v1939_v36 = vadd.f32 %v1916_v13, %v1800_v11  ;;  %3373 = vmatprep.mubr.f32.mxu1 %v2096_v31  ;;  %v2090_v29 = vadd.f32 %v2543_v34, %v2075_v61  ;;  %v2099_v22 = vmax.f32 %v2091_v25, 0.0  ;;  %v4495_v12 = vld [vmem:[#allocation26_spill] sm:$0xff] }
 0x2e0   : > { %v3296_v47 = vpop.f32.mrf.mxu1  ;;  %3374 = vmatmul.mubr.f32.vlgmr.msra.gmra.mxu1 %v2097_v40 }
 0x2e1   : > { %v2077_v9 = vadd.f32 %v2054_v8, %v1939_v36  ;;  %v1942_v35 = vadd.f32 %v3296_v47, %v1803_v60  ;;  %3445 = vmatpush3.msra.mxu1 %v4486_v37  ;;  %v2098_v55 = vmax.f32 %v2090_v29, 0.0  ;;  %v2093_v58 = vadd.f32 %v2543_v34, %v2078_v27 }
 0x2e2   : > { %3430 = vmatprep.subr.mxu1 %v4487_v46  ;;  %v1926_v63 = vpop.f32.mrf.mxu1 }
 0x2e3   : > { %v2080_v51 = vadd.f32 %v3340_v44, %v1942_v35  ;;  %v1941_v14 = vadd.f32 %v1926_v63, %v1802_v4  ;;  %3446 = vmatpush3.msra.mxu1 %v4487_v46  ;;  %3376 = vmatprep.mubr.f32.mxu1 %v2098_v55  ;;  %v2092_v15 = vadd.f32 %v2543_v34, %v2077_v9  ;;  %v2101_v21 = vmax.f32 %v2093_v58, 0.0 }
 0x2e4   : > { %3431 = vmatprep.subr.mxu1 %v4488_v18  ;;  %3377 = vmatmul.mubr.f32.gmra.mxu1 %v2099_v22 }
 0x2e5   : > { %v2079_v24 = vadd.f32 %v2064_v32, %v1941_v14  ;;  %3447 = vmatpush3.msra.mxu1 %v4488_v18  ;;  %v2100_v7 = vmax.f32 %v2092_v15, 0.0  ;;  %v2095_v19 = vadd.f32 %v2543_v34, %v2080_v51 }
 0x2e6   : > { %3432 = vmatprep.subr.mxu1 %v4489_v33 }
 0x2e7   : > { %3448 = vmatpush3.msra.mxu1 %v4489_v33  ;;  %3379 = vmatprep.mubr.f32.mxu1 %v2100_v7  ;;  %v2094_v39 = vadd.f32 %v2543_v34, %v2079_v24  ;;  %v2103_v16 = vmax.f32 %v2095_v19, 0.0  ;;  %v4493_v34 = vld [vmem:[#allocation24_spill] sm:$0xff] }
 0x2e8   : > { %3433 = vmatprep.subr.mxu1 %v4490_v42  ;;  %3380 = vmatmul.mubr.f32.gmra.mxu1 %v2101_v21 }
 0x2e9   : > { %3449 = vmatpush3.msra.mxu1 %v4490_v42  ;;  %v2102_v6 = vmax.f32 %v2094_v39, 0.0 }
 0x2ea   : > { %3434 = vmatprep.subr.mxu1 %v4491_v2 }
 0x2eb   : > { %3450 = vmatpush3.msra.mxu1 %v4491_v2  ;;  %3382 = vmatprep.mubr.f32.mxu1 %v2102_v6 }
 0x2ec   : > { %3435 = vmatprep.subr.mxu1 %v4492_v10  ;;  %3383 = vmatmul.mubr.f32.gmra.mxu1 %v2103_v16 }
 0x2ed   : > { %3451 = vmatpush3.msra.mxu1 %v4492_v10  ;;  %3423 = vmatprep.mubr.f32.mxu1 %v2236_v41 }
 0x2ee   : > { %3436 = vmatprep.subr.mxu1 %v4493_v34 }
 0x2ef   : > { %3452 = vmatpush3.msra.mxu1 %v4493_v34 }
 0x2f0   : > { %3437 = vmatprep.subr.mxu1 %v4494_v57 }
 0x2f1   : > { %3453 = vmatpush3.msra.mxu1 %v4494_v57 }
 0x2f2   : > { %3438 = vmatprep.subr.mxu1 %v4495_v12 }
 0x2f3   : > { %3454 = vmatpush3.msra.mxu1 %v4495_v12 }
 0x2f4   : > { %3439 = vmatprep.subr.mxu1 %v4496_v43 }
 0x2f5   : > { %3455 = vmatpush3.msra.mxu1 %v4496_v43 }
 0x2f6   : > { %3440 = vmatprep.subr.mxu1 %v4497_v30 }
 0x2f7   : > { %3456 = vmatpush3.msra.mxu1 %v4497_v30 }
 0x2f8   : > { %3441 = vmatprep.subr.mxu1 %v4498_v45  ;;  %v3419_v50 = vpop.f32.mrf.mxu0 }
 0x2f9   : > { %3457 = vmatpush3.msra.mxu1 %v4498_v45 }
 0x2fa   : > { %3442 = vmatprep.subr.mxu1 %v4499_v20  ;;  %v2322_v1 = vpop.f32.mrf.mxu0 }
 0x2fb   : > { %3458 = vmatpush3.msra.mxu1 %v4499_v20 }
 0x2fc   : > { %3443 = vmatprep.subr.mxu1 %v4500_v48  ;;  %v3422_v53 = vpop.f32.mrf.mxu0 }
 0x2fd   : > { %3459 = vmatpush3.msra.mxu1 %v4500_v48 }
 0x2fe   : > { %3444 = vmatprep.subr.mxu1 %v4501_v26  ;;  %v2332_v31 = vpop.f32.mrf.mxu0 }
 0x2ff   : > { %3460 = vmatpush3.msra.mxu1 %v4501_v26 }
 0x300   : > { %3424 = vmatmul.mubr.f32.vlgmr.msra.gmra.mxu1 %v2237_v17 }
 0x301   : > { %3426 = vmatprep.mubr.f32.mxu1 %v2238_v52 }
 0x304   : > { %3427 = vmatmul.mubr.f32.gmra.mxu1 %v2239_v54 }
 0x3a0   : > { %v3375_v62 = vpop.f32.mrf.mxu1 }
 0x3a1   : > { %v2199_v3 = vadd.f32 %v3375_v62, %v2544_v56 }
 0x3a2   : > { %v2193_v49 = vpop.f32.mrf.mxu1 }
 0x3a3   : > { %v2194_v8 = vadd.f32 %v2544_v56, %v2193_v49  ;;  %v2362_v28 = vadd.f32 %v3419_v50, %v2199_v3 }
 0x3a4   : > { %v3378_v59 = vpop.f32.mrf.mxu1 }
 0x3a5   : > { %v2377_v11 = vadd.f32 %v2545_v5, %v2362_v28  ;;  %v2209_v23 = vadd.f32 %v3378_v59, %v2544_v56  ;;  %v2361_v61 = vadd.f32 %v2322_v1, %v2194_v8 }
 0x3a6   : > { %v2203_v0 = vpop.f32.mrf.mxu1 }
 0x3a7   : > { %v2385_v40 = vmax.f32 %v2377_v11, 0.0  ;;  %v2376_v13 = vadd.f32 %v2545_v5, %v2361_v61  ;;  %v2204_v25 = vadd.f32 %v2544_v56, %v2203_v0  ;;  %v2364_v27 = vadd.f32 %v3422_v53, %v2209_v23 }
 0x3a8   : > { %v3381_v9 = vpop.f32.mrf.mxu1 }
 0x3a9   : > { %2393 = vst [vmem:[%s4331_s1 + $0x8] sm:$0xff] %v2385_v40  ;;  %v2384_v36 = vmax.f32 %v2376_v13, 0.0  ;;  %v2379_v38 = vadd.f32 %v2545_v5, %v2364_v27  ;;  %v2363_v60 = vadd.f32 %v2332_v31, %v2204_v25  ;;  %v2219_v55 = vadd.f32 %v3381_v9, %v2544_v56 }
 0x3aa   : > { %v2213_v35 = vpop.f32.mrf.mxu1 }
 0x3ab   : > { %2392 = vst [vmem:[%s4331_s1] sm:$0xff] %v2384_v36  ;;  %v2387_v29 = vmax.f32 %v2379_v38, 0.0  ;;  %v2378_v44 = vadd.f32 %v2545_v5, %v2363_v60  ;;  %v2214_v63 = vadd.f32 %v2544_v56, %v2213_v35 }
 0x3ac   : > { %v3384_v37 = vpop.f32.mrf.mxu1 }
 0x3ad   : > { %2395 = vst [vmem:[%s4331_s1 + $0x18] sm:$0xff] %v2387_v29  ;;  %v2386_v47 = vmax.f32 %v2378_v44, 0.0  ;;  %v2229_v51 = vadd.f32 %v3384_v37, %v2544_v56 }
 0x3ae   : > { %v2223_v4 = vpop.f32.mrf.mxu1 }
 0x3af   : > { %2394 = vst [vmem:[%s4331_s1 + $0x10] sm:$0xff] %v2386_v47  ;;  %v2224_v18 = vadd.f32 %v2544_v56, %v2223_v4 }
 0x3c0   : > { %v3425_v46 = vpop.f32.mrf.mxu1 }
 0x3c1   : > { %v2366_v22 = vadd.f32 %v3425_v46, %v2219_v55 }
 0x3c2   : > { %v2342_v58 = vpop.f32.mrf.mxu1 }
 0x3c3   : > { %v2381_v14 = vadd.f32 %v2545_v5, %v2366_v22  ;;  %v2365_v15 = vadd.f32 %v2342_v58, %v2214_v63 }
 0x3c4   : > { %v3428_v32 = vpop.f32.mrf.mxu1 }
 0x3c5   : > { %v2389_v24 = vmax.f32 %v2381_v14, 0.0  ;;  %v2380_v7 = vadd.f32 %v2545_v5, %v2365_v15  ;;  %v2368_v33 = vadd.f32 %v3428_v32, %v2229_v51 }
 0x3c6   : > { %v2352_v21 = vpop.f32.mrf.mxu1 }
 0x3c7   : > { %2397 = vst [vmem:[%s4331_s1 + $0x28] sm:$0xff] %v2389_v24  ;;  %v2388_v19 = vmax.f32 %v2380_v7, 0.0  ;;  %v2383_v39 = vadd.f32 %v2545_v5, %v2368_v33  ;;  %v2367_v42 = vadd.f32 %v2352_v21, %v2224_v18 }
 0x3c9   : > { %2396 = vst [vmem:[%s4331_s1 + $0x20] sm:$0xff] %v2388_v19  ;;  %v2391_v6 = vmax.f32 %v2383_v39, 0.0  ;;  %v2382_v2 = vadd.f32 %v2545_v5, %v2367_v42 }
 0x3cb   : > { %2399 = vst [vmem:[%s4331_s1 + $0x38] sm:$0xff] %v2391_v6  ;;  %v2390_v16 = vmax.f32 %v2382_v2, 0.0 }
 0x3cd   : > { %2398 = vst [vmem:[%s4331_s1 + $0x30] sm:$0xff] %v2390_v16 }
 0x3ce   : > { %3698 = shalt.err (!%p3695_p5)
}
 0x3cf   : > { %s3699_s20 = scalar_lea.hbm %s4346_s15, 1024  ;;  %s3703_s28 = scalar_lea.hbm %s4400_s9, 2048 }
 0x3d0   : > { %p3700_p6 = scmp.ne.s32.totalorder %s4346_s15, %s3699_s20  ;;  %p3704_p9 = scmp.lt.s32.totalorder %s4346_s15, %s4400_s9 }
 0x3d1   : > { %p3705_p2 = scmp.lt.s32.totalorder %s3703_s28, %s3699_s20 }
 0x3d2   : > { %p3701_p4 = pnand %p3700_p6, %p4502_p12 }
 0x3d3   : > { %p3706_p3 = por %p3705_p2, %p3704_p9 }
 0x3d4   : > { %p3702_p8 = pneg %p3701_p4 }
 0x3d6   : > { %p3707_p10 = pnand %p3706_p3, %p3702_p8 }
 0x3d8   : > { %3710 = shalt.err (!%p3707_p10)
}
 0x3d9   : > { %s3768_s22 = smov 128   ;;  %s3769_s24 = smov 8  }
 0x3da   : > { %3479 = dma.vmem_to_hbm [thread:$0]  (%p4502_p12), %s4340_s29, 1024, %s4346_s15, %s2401_s17, %s3768_s22, %s3768_s22, %s3769_s24  }
 0x3db PF: > { %s2429_s26 = sand.u32 1, %s3745_s30   ;;  %p4503_p7 = scmp.ne.s32.totalorder %s4442_s16, 0 }
 0x3dc   : > { %p4504_p1 = scmp.ge.s32.totalorder %s3757_s12, 2  ;;  %s2430_s13 = scalar_lea.sflag [#allocation5], %s2429_s26 }
 0x3de   : > { %p3499_p13 = pnand %p4504_p1, %p4503_p7 }
 0x3e0   : > { %p3500_p0 = pneg %p3499_p13 }
 0x3e2   : > { %3740 = dma.done.wait (%p3500_p0), %s2430_s13, 1024  }
 0x3e3   : > { %3742 = vsyncadd (%p3500_p0), %s2430_s13, 4294966272  ;;  %p24_p11 = scmp.ge.s32.totalorder %s3920_s18, 4   ;;  %s4505_s30 = smov %s3749_s10 }
 0x3e4   : > { %s4506_s10 = smov %s3753_s11  ;;  %s4507_s11 = smov %s3936_s23 }
 0x3e5   : > { %s4508_s12 = smov %s3920_s18  ;;  %26 = sbr.rel (!%p24_p11) target bundleno = 11 (0xb), region = 132 }
 0x3ea   :  { %2435 = vsyncpa [#allocation4], 1 }
 0x3eb   :  { %2437 = vsyncpa [#allocation4 + $0x1], 1 }
 0x3ec   :  { %2438 = vsyncpa [#allocation7], 1 }
 0x3ed   :  { %2439 = vsyncpa [#allocation10], 1 }
 0x3ee   :  { %2440 = vsyncpa [#allocation5], 1 }
 0x3ef   :  { %2442 = vsyncpa [#allocation5 + $0x1], 1 }

</bundles_post_ra>
